<compile_context>
chip_gen: v7x
topology: tpu7x:2x2x1
jax: 0.10.0
libtpu: 0.0.40
codegen_flags: <defaults>
</compile_context>

<pallas_src>
import jax
import jax.numpy as jnp
from jax import lax
from jax.experimental import pallas as pl
from jax.experimental.pallas import tpu as pltpu


# ----------------------------------------------------------------------------
# Shared gate math
# ----------------------------------------------------------------------------
def _sigmoid(x):
    # sigmoid(x) = 0.5 * tanh(0.5*x) + 0.5  (one EUP tanh + one VPU fma; cheaper
    # than the exp + add + divide lowering of jax.nn.sigmoid on the serial chain)
    return 0.5 * jnp.tanh(0.5 * x) + 0.5


def _lstm_cell(gates, h_prev, c_prev, valid, H):
    """PyTorch gate order i, f, g, o. All elementwise math in f32."""
    i = _sigmoid(gates[:, 0 * H:1 * H])
    f = _sigmoid(gates[:, 1 * H:2 * H])
    g = jnp.tanh(gates[:, 2 * H:3 * H])
    o = _sigmoid(gates[:, 3 * H:4 * H])
    c_new = f * c_prev + i * g
    h_new = o * jnp.tanh(c_new)
    # pack_padded_sequence semantics: freeze state past the sequence length,
    # zero the padded output positions.
    h_out = jnp.where(valid, h_new, h_prev)
    c_out = jnp.where(valid, c_new, c_prev)
    y_out = jnp.where(valid, h_new, 0.0)
    return h_out, c_out, y_out


# ----------------------------------------------------------------------------
# Kernel A: single invocation (grid=(1,)), both directions interleaved on one core.
# Best on v5e/v6e (1 TC per chip): the two chains' MXU latency / gate math overlap.
# ----------------------------------------------------------------------------
def _bilstm_interleaved_kernel(lens_ref, gx_ref, whf_ref, whb_ref,
                               h0_ref, c0_ref, out_ref, hn_ref):
    """
    lens_ref : (B, 1) int32   sequence lengths
    gx_ref   : (2, T, B, 4H)  x-projection + biases (compute dtype), natural time
               order for BOTH directions ([0]=fwd, [1]=bwd)
    whf_ref  : (H, 4H)        Whh_f^T  (compute dtype)
    whb_ref  : (H, 4H)        Whh_b^T  (compute dtype)
    h0_ref   : (2, B, H) f32  initial hidden  ([0]=fwd, [1]=bwd)
    c0_ref   : (2, B, H) f32  initial cell
    out_ref  : (2, T, B, H) f32  per-timestep hidden (0 at padding)
    hn_ref   : (2, B, H) f32  final hidden states
    """
    _, T, B, G4 = gx_ref.shape
    H = G4 // 4
    lens = lens_ref[...]                       # (B, 1) int32
    whf = whf_ref[...]
    whb = whb_ref[...]
    cdt = whf.dtype

    def step(t, carry):
        h_f, c_f, h_b, c_b = carry             # four independent (B, H) carries
        tb = T - 1 - t
        # Two INDEPENDENT recurrent matmuls -> the scheduler hides one direction's
        # MXU latency under the other's sigmoid/tanh work (no concat/reslice chain).
        gates_f = gx_ref[0, t].astype(jnp.float32) + jnp.dot(
            h_f.astype(cdt), whf, preferred_element_type=jnp.float32)
        gates_b = gx_ref[1, tb].astype(jnp.float32) + jnp.dot(
            h_b.astype(cdt), whb, preferred_element_type=jnp.float32)
        valid_f = lens > t                     # (B, 1) bool
        valid_b = lens > tb
        h_f, c_f, y_f = _lstm_cell(gates_f, h_f, c_f, valid_f, H)
        h_b, c_b, y_b = _lstm_cell(gates_b, h_b, c_b, valid_b, H)
        out_ref[0, t] = y_f                    # forward hidden at time t
        out_ref[1, tb] = y_b                   # backward hidden at time T-1-t
        return (h_f, c_f, h_b, c_b)

    unroll = True if T <= 32 else 8            # partial unroll for long sequences
    h_f, c_f, h_b, c_b = lax.fori_loop(
        0, T, step, (h0_ref[0], c0_ref[0], h0_ref[1], c0_ref[1]), unroll=unroll)
    hn_ref[0] = h_f
    hn_ref[1] = h_b


# ----------------------------------------------------------------------------
# Kernel B: direction-parallel (grid=(2,), "parallel").  On v7x the two grid points
# land on the two TensorCores; on 1-TC chips this just loops sequentially.
# ----------------------------------------------------------------------------
def _bilstm_dirparallel_kernel(lens_ref, gx_ref, wh_ref, h0_ref, c0_ref,
                               out_ref, hn_ref):
    """
    Grid axis 0 = direction (0 = forward, 1 = backward).
    lens_ref : (B, 1) int32
    gx_ref   : (1, T, B, 4H)  this direction's x-projection (natural time order)
    wh_ref   : (1, H, 4H)     this direction's Whh^T
    h0_ref   : (1, B, H) f32
    c0_ref   : (1, B, H) f32
    out_ref  : (1, T, B, H) f32
    hn_ref   : (1, B, H) f32
    """
    d = pl.program_id(0)
    _, T, B, G4 = gx_ref.shape
    H = G4 // 4
    lens = lens_ref[...]
    wh = wh_ref[0]
    cdt = wh.dtype
    reverse = d == 1

    def step(t, carry):
        h, c = carry
        row = jnp.where(reverse, T - 1 - t, t)
        gates = gx_ref[0, row].astype(jnp.float32) + jnp.dot(
            h.astype(cdt), wh, preferred_element_type=jnp.float32)
        valid = lens > row
        h, c, y = _lstm_cell(gates, h, c, valid, H)
        out_ref[0, row] = y
        return (h, c)

    unroll = True if T <= 32 else 8
    h, _ = lax.fori_loop(0, T, step, (h0_ref[0], c0_ref[0]), unroll=unroll)
    hn_ref[0] = h


# ----------------------------------------------------------------------------
# Helpers
# ----------------------------------------------------------------------------
def _vmem_capacity_bytes():
    try:
        info = pltpu.get_tpu_info()
        for attr in ("vmem_capacity_bytes", "vmem_bytes", "vmem_size_bytes"):
            v = getattr(info, attr, None)
            if v:
                return int(v)
    except Exception:
        pass
    return 64 << 20   # conservative (v7x per-core VMEM)


def _default_direction_parallel():
    # Split the two direction chains across TensorCores only on 2-TC chips (v7x).
    try:
        return "v7" in jax.devices()[0].device_kind.lower()
    except Exception:
        return False


# ----------------------------------------------------------------------------
# Wrapper (glue): embedding lookup, hoisted input projection, batch padding,
# layout plumbing, pallas_call.
# ----------------------------------------------------------------------------
def rnn_encoder_forward(captions, cap_lens, hidden, params, nhidden_dir,
                        compute_dtype=jnp.float32, direction_parallel=None):
    """Returns (words_emb, sent_emb) with PyTorch RNN_ENCODER semantics.

    compute_dtype: dtype of MXU inputs and of the VMEM-resident gates_x buffer
    (bf16 recommended on v6e/v7x); accumulation and gate math are always f32.
    direction_parallel: run each LSTM direction as its own ("parallel") grid point
    so v7x's two TensorCores each take one chain.  None -> auto (v7 only).
    """
    if direction_parallel is None:
        direction_parallel = _default_direction_parallel()

    H = nhidden_dir
    B0, T = captions.shape
    NI = params["embedding"].shape[1]

    # Pad batch to the f32 sublane multiple (8): per-step (B, H) stores become
    # unmasked and MXU rows fill better.  Padded rows get cap_len = 0, so their
    # state stays frozen at h0 = 0 and their outputs are zero; sliced off at the end.
    SUB = 8
    B = ((B0 + SUB - 1) // SUB) * SUB
    pad_b = B - B0
    captions_p = jnp.pad(captions, ((0, pad_b), (0, 0)))
    lens_p = jnp.pad(cap_lens.astype(jnp.int32), (0, pad_b))
    lens2d = lens_p.reshape(B, 1)

    # Embedding + dropout (eval mode -> identity); time-major layout.
    emb = jnp.take(params["embedding"], captions_p, axis=0)        # (B, T, NI)
    emb_t = jnp.transpose(emb, (1, 0, 2))                          # (T, B, NI)

    # ---- hoisted input projection: one (T*B, NI) x (NI, 8H) matmul ----
    w_x = jnp.concatenate([params["w_ih_f"].T, params["w_ih_b"].T],
                          axis=1).astype(compute_dtype)            # (NI, 8H)
    b_cat = jnp.concatenate([params["b_ih_f"] + params["b_hh_f"],
                             params["b_ih_b"] + params["b_hh_b"]]) # (8H,) f32
    gx = jnp.dot(emb_t.reshape(T * B, NI).astype(compute_dtype), w_x,
                 preferred_element_type=jnp.float32)
    gx = gx.reshape(T, B, 8 * H) + b_cat                           # f32 bias add
    # Split the two directions onto a LEADING axis (no time reversal, no lane concat):
    # (T, B, 8H) -> (2, T, B, 4H); the kernel reads the backward half at row T-1-t.
    gx = jnp.transpose(gx.reshape(T, B, 2, 4 * H), (2, 0, 1, 3))
    gx = gx.astype(compute_dtype)   # bf16-resident gx on the bf16 path (halves DMA)

    # ---- per-direction recurrent weights (no block-diagonal zero padding) ----
    whf = params["w_hh_f"].T.astype(compute_dtype)                 # (H, 4H)
    whb = params["w_hh_b"].T.astype(compute_dtype)                 # (H, 4H)

    h0, c0 = hidden                                                # each (2, B0, H)
    h0_p = jnp.pad(h0, ((0, 0), (0, pad_b), (0, 0))).astype(jnp.float32)  # (2, B, H)
    c0_p = jnp.pad(c0, ((0, 0), (0, pad_b), (0, 0))).astype(jnp.float32)

    # VMEM budget: raw block bytes x2 (Pallas double-buffers every in/out BlockSpec,
    # even at trivial grids) + compiler/internal scratch headroom, capped at 80% of
    # the queried per-core capacity.
    gsz = jnp.dtype(compute_dtype).itemsize
    block_bytes = (2 * T * B * 4 * H * gsz        # gx
                   + 2 * T * B * H * 4            # out
                   + 2 * H * 4 * H * gsz          # whh (both directions)
                   + 6 * B * H * 4                # h0 / c0 / hn
                   + B * 4)                       # lens
    vmem_limit_bytes = int(min(2 * block_bytes + (16 << 20),
                               int(0.8 * _vmem_capacity_bytes())))

    out_shapes = (jax.ShapeDtypeStruct((2, T, B, H), jnp.float32),
                  jax.ShapeDtypeStruct((2, B, H), jnp.float32))

    if direction_parallel:
        wh = jnp.stack([whf, whb], axis=0)                         # (2, H, 4H)
        out, hn = pl.pallas_call(
            _bilstm_dirparallel_kernel,
            out_shape=out_shapes,
            grid_spec=pltpu.PrefetchScalarGridSpec(
                num_scalar_prefetch=0,
                grid=(2,),                                         # direction axis
                in_specs=[
                    pl.BlockSpec((B, 1), lambda d: (0, 0)),              # lens
                    pl.BlockSpec((1, T, B, 4 * H), lambda d: (d, 0, 0, 0)),  # gx[d]
                    pl.BlockSpec((1, H, 4 * H), lambda d: (d, 0, 0)),    # whh[d]
                    pl.BlockSpec((1, B, H), lambda d: (d, 0, 0)),        # h0[d]
                    pl.BlockSpec((1, B, H), lambda d: (d, 0, 0)),        # c0[d]
                ],
                out_specs=[
                    pl.BlockSpec((1, T, B, H), lambda d: (d, 0, 0, 0)),  # out[d]
                    pl.BlockSpec((1, B, H), lambda d: (d, 0, 0)),        # hn[d]
                ],
            ),
            compiler_params=pltpu.CompilerParams(
                dimension_semantics=("parallel",),                 # 2 TCs on v7x
                vmem_limit_bytes=vmem_limit_bytes),
        )(lens2d, gx, wh, h0_p, c0_p)
    else:
        full = lambda i: (0, 0)
        full3 = lambda i: (0, 0, 0)
        full4 = lambda i: (0, 0, 0, 0)
        out, hn = pl.pallas_call(
            _bilstm_interleaved_kernel,
            out_shape=out_shapes,
            grid_spec=pltpu.PrefetchScalarGridSpec(
                num_scalar_prefetch=0,
                grid=(1,),
                in_specs=[
                    pl.BlockSpec((B, 1), full),                    # lens
                    pl.BlockSpec((2, T, B, 4 * H), full4),         # gx (both dirs)
                    pl.BlockSpec((H, 4 * H), full),                # Whh_f^T
                    pl.BlockSpec((H, 4 * H), full),                # Whh_b^T
                    pl.BlockSpec((2, B, H), full3),                # h0
                    pl.BlockSpec((2, B, H), full3),                # c0
                ],
                out_specs=[
                    pl.BlockSpec((2, T, B, H), full4),             # per-step hidden
                    pl.BlockSpec((2, B, H), full3),                # final hidden
                ],
            ),
            compiler_params=pltpu.CompilerParams(
                dimension_semantics=("arbitrary",),
                vmem_limit_bytes=vmem_limit_bytes),
        )(lens2d, gx, whf, whb, h0_p, c0_p)

    # Assemble PyTorch-layout outputs and drop batch padding.
    out_cat = jnp.concatenate([out[0], out[1]], axis=-1)           # (T, B, 2H)
    words_emb = jnp.transpose(out_cat, (1, 2, 0))[:B0]             # (B0, 2H, T)
    sent_emb = jnp.concatenate([hn[0], hn[1]], axis=-1)[:B0]       # (B0, 2H)
    return words_emb, sent_emb


# ----------------------------------------------------------------------------
# Pure-JAX reference (same math) used for a correctness check.
# ----------------------------------------------------------------------------
def rnn_encoder_reference(captions, cap_lens, hidden, params, H):
    emb = jnp.take(params["embedding"], captions, axis=0)  # (B, T, NI)
    B, T, _ = emb.shape
    lens = cap_lens.astype(jnp.int32)

    def run_dir(wih, whh, bih, bhh, h0, c0, reverse):
        def step(carry, t):
            h, c = carry
            x = emb[:, t, :]
            gates = x @ wih.T + h @ whh.T + bih + bhh
            i = jax.nn.sigmoid(gates[:, :H])
            f = jax.nn.sigmoid(gates[:, H:2 * H])
            g = jnp.tanh(gates[:, 2 * H:3 * H])
            o = jax.nn.sigmoid(gates[:, 3 * H:])
            c_new = f * c + i * g
            h_new = o * jnp.tanh(c_new)
            m = (lens > t).astype(jnp.float32)[:, None]
            return (m * h_new + (1 - m) * h, m * c_new + (1 - m) * c), m * h_new

        ts = jnp.arange(T)
        if reverse:
            ts = ts[::-1]
        (hn, _), outs = lax.scan(step, (h0, c0), ts)
        if reverse:
            outs = outs[::-1]
        return outs, hn                                     # outs: (T, B, H)

    h0, c0 = hidden
    of, hf = run_dir(params["w_ih_f"], params["w_hh_f"],
                     params["b_ih_f"], params["b_hh_f"], h0[0], c0[0], False)
    ob, hb = run_dir(params["w_ih_b"], params["w_hh_b"],
                     params["b_ih_b"], params["b_hh_b"], h0[1], c0[1], True)
    out = jnp.concatenate([of, ob], axis=-1)                # (T, B, 2H)
    words_emb = jnp.transpose(out, (1, 2, 0))               # (B, 2H, T)
    sent_emb = jnp.concatenate([hf, hb], axis=-1)           # (B, 2H)
    return words_emb, sent_emb


def init_params(key, ntoken, ninput, H):
    ks = jax.random.split(key, 9)
    std = 1.0 / (H ** 0.5)
    u = lambda k, shape, lo, hi: jax.random.uniform(k, shape, jnp.float32, lo, hi)
    return dict(
        embedding=u(ks[0], (ntoken, ninput), -0.1, 0.1),
        w_ih_f=u(ks[1], (4 * H, ninput), -std, std),
        w_hh_f=u(ks[2], (4 * H, H), -std, std),
        b_ih_f=u(ks[3], (4 * H,), -std, std),
        b_hh_f=u(ks[4], (4 * H,), -std, std),
        w_ih_b=u(ks[5], (4 * H, ninput), -std, std),
        w_hh_b=u(ks[6], (4 * H, H), -std, std),
        b_ih_b=u(ks[7], (4 * H,), -std, std),
        b_hh_b=u(ks[8], (4 * H,), -std, std),
    )


if __name__ == "__main__":
    # Small shapes consistent with the module: ntoken=50, ninput=32,
    # nhidden=32 (-> 16 per direction), nlayers=1, bidirectional, B=2, T=8.
    ntoken, ninput, nhidden = 50, 32, 32
    num_directions = 2
    H = nhidden // num_directions
    B, T = 2, 8

    key = jax.random.PRNGKey(0)
    kp, kc = jax.random.split(key)
    params = init_params(kp, ntoken, ninput, H)

    captions = jax.random.randint(kc, (B, T), 0, ntoken, dtype=jnp.int32)
    cap_lens = jnp.array([T, 5], dtype=jnp.int32)   # sorted descending (pack requirement)

    # init_hidden(bsz): zeros of shape (nlayers*num_directions, B, H) for h and c
    hidden = (jnp.zeros((2, B, H), jnp.float32), jnp.zeros((2, B, H), jnp.float32))

    w_ref, s_ref = rnn_encoder_reference(captions, cap_lens, hidden, params, H)

    # f32 MXU-input path: check BOTH kernel variants (interleaved single-core and
    # direction-parallel grid) against the f32 reference.
    for dp in (False, True):
        we32, se32 = rnn_encoder_forward(captions, cap_lens, hidden, params, H,
                                         compute_dtype=jnp.float32,
                                         direction_parallel=dp)
        jax.block_until_ready((we32, se32))
        assert we32.shape == (B, num_directions * H, T)
        assert se32.shape == (B, num_directions * H)
        assert jnp.allclose(we32, w_ref, atol=1e-4, rtol=1e-4), f"words mismatch dp={dp}"
        assert jnp.allclose(se32, s_ref, atol=1e-4, rtol=1e-4), f"sent mismatch dp={dp}"

    # bf16 MXU-input + bf16-resident gx path (recommended on v6e/v7x);
    # f32 accumulation & gate math.  Variant auto-selected from the device.
    webf, sebf = rnn_encoder_forward(captions, cap_lens, hidden, params, H,
                                     compute_dtype=jnp.bfloat16)
    jax.block_until_ready((webf, sebf))
    assert jnp.allclose(webf, w_ref, atol=5e-2, rtol=5e-2)
    assert jnp.allclose(sebf, s_ref, atol=5e-2, rtol=5e-2)

    print("KERNEL_OK")
</pallas_src>

<mosaic_0001>
module attributes {stable_mosaic.version = 11 : i64} {
  func.func @_bilstm_interleaved_kernel(%arg0: i32, %arg1: memref<8x1xi32, #tpu.memory_space<vmem>>, %arg2: memref<2x8x8x64xf32, #tpu.memory_space<vmem>>, %arg3: memref<16x64xf32, #tpu.memory_space<vmem>>, %arg4: memref<16x64xf32, #tpu.memory_space<vmem>>, %arg5: memref<2x8x16xf32, #tpu.memory_space<vmem>>, %arg6: memref<2x8x16xf32, #tpu.memory_space<vmem>>, %arg7: memref<2x8x8x16xf32, #tpu.memory_space<vmem>>, %arg8: memref<2x8x16xf32, #tpu.memory_space<vmem>>) attributes {dimension_semantics = [#tpu.dimension_semantics<arbitrary>], iteration_bounds = array<i64: 1>, scalar_prefetch = 0 : i64, scratch_operands = 0 : i64, tpu.core_type = #tpu.core_type<tc>, window_params = [{pipeline_mode = #tpu.pipeline_mode<synchronous>, transform_indices = @transform_0, window_bounds = array<i64: 8, 1>}, {pipeline_mode = #tpu.pipeline_mode<synchronous>, transform_indices = @transform_1, window_bounds = array<i64: 2, 8, 8, 64>}, {pipeline_mode = #tpu.pipeline_mode<synchronous>, transform_indices = @transform_2, window_bounds = array<i64: 16, 64>}, {pipeline_mode = #tpu.pipeline_mode<synchronous>, transform_indices = @transform_3, window_bounds = array<i64: 16, 64>}, {pipeline_mode = #tpu.pipeline_mode<synchronous>, transform_indices = @transform_4, window_bounds = array<i64: 2, 8, 16>}, {pipeline_mode = #tpu.pipeline_mode<synchronous>, transform_indices = @transform_5, window_bounds = array<i64: 2, 8, 16>}, {pipeline_mode = #tpu.pipeline_mode<synchronous>, transform_indices = @transform_6, window_bounds = array<i64: 2, 8, 8, 16>}, {pipeline_mode = #tpu.pipeline_mode<synchronous>, transform_indices = @transform_7, window_bounds = array<i64: 2, 8, 16>}]} {
    %c0 = arith.constant 0 : index
    %c0_0 = arith.constant 0 : index
    %0 = vector.load %arg1[%c0, %c0_0] : memref<8x1xi32, #tpu.memory_space<vmem>>, vector<8x1xi32>
    %c0_1 = arith.constant 0 : index
    %c0_2 = arith.constant 0 : index
    %1 = vector.load %arg3[%c0_1, %c0_2] : memref<16x64xf32, #tpu.memory_space<vmem>>, vector<16x64xf32>
    %c0_3 = arith.constant 0 : index
    %c0_4 = arith.constant 0 : index
    %2 = vector.load %arg4[%c0_3, %c0_4] : memref<16x64xf32, #tpu.memory_space<vmem>>, vector<16x64xf32>
    %c0_5 = arith.constant 0 : index
    %c0_6 = arith.constant 0 : index
    %c0_7 = arith.constant 0 : index
    %3 = vector.load %arg5[%c0_5, %c0_6, %c0_7] : memref<2x8x16xf32, #tpu.memory_space<vmem>>, vector<1x8x16xf32>
    %4 = vector.shape_cast %3 : vector<1x8x16xf32> to vector<8x16xf32>
    %c0_8 = arith.constant 0 : index
    %c0_9 = arith.constant 0 : index
    %c0_10 = arith.constant 0 : index
    %5 = vector.load %arg6[%c0_8, %c0_9, %c0_10] : memref<2x8x16xf32, #tpu.memory_space<vmem>>, vector<1x8x16xf32>
    %6 = vector.shape_cast %5 : vector<1x8x16xf32> to vector<8x16xf32>
    %c1 = arith.constant 1 : index
    %c0_11 = arith.constant 0 : index
    %c0_12 = arith.constant 0 : index
    %7 = vector.load %arg5[%c1, %c0_11, %c0_12] : memref<2x8x16xf32, #tpu.memory_space<vmem>>, vector<1x8x16xf32>
    %8 = vector.shape_cast %7 : vector<1x8x16xf32> to vector<8x16xf32>
    %c1_13 = arith.constant 1 : index
    %c0_14 = arith.constant 0 : index
    %c0_15 = arith.constant 0 : index
    %9 = vector.load %arg6[%c1_13, %c0_14, %c0_15] : memref<2x8x16xf32, #tpu.memory_space<vmem>>, vector<1x8x16xf32>
    %10 = vector.shape_cast %9 : vector<1x8x16xf32> to vector<8x16xf32>
    %c0_i32 = arith.constant 0 : i32
    %c7_i32 = arith.constant 7 : i32
    %11 = arith.subi %c7_i32, %c0_i32 : i32
    %c0_16 = arith.constant 0 : index
    %12 = arith.index_cast %c0_i32 : i32 to index
    %c0_17 = arith.constant 0 : index
    %c0_18 = arith.constant 0 : index
    %13 = vector.load %arg2[%c0_16, %12, %c0_17, %c0_18] : memref<2x8x8x64xf32, #tpu.memory_space<vmem>>, vector<1x1x8x64xf32>
    %14 = vector.shape_cast %13 : vector<1x1x8x64xf32> to vector<8x64xf32>
    %cst = arith.constant dense<0.000000e+00> : vector<8x64xf32>
    %15 = tpu.matmul %4, %1, %cst {dimension_numbers = #tpu.dot_dimension_numbers<[1], [0], [0], [1], [0, 0, 1, 1], [], []>} : vector<8x16xf32>, vector<16x64xf32>, vector<8x64xf32> -> vector<8x64xf32>
    %16 = arith.addf %14, %15 : vector<8x64xf32>
    %c1_19 = arith.constant 1 : index
    %17 = arith.index_cast %11 : i32 to index
    %c0_20 = arith.constant 0 : index
    %c0_21 = arith.constant 0 : index
    %18 = vector.load %arg2[%c1_19, %17, %c0_20, %c0_21] : memref<2x8x8x64xf32, #tpu.memory_space<vmem>>, vector<1x1x8x64xf32>
    %19 = vector.shape_cast %18 : vector<1x1x8x64xf32> to vector<8x64xf32>
    %cst_22 = arith.constant dense<0.000000e+00> : vector<8x64xf32>
    %20 = tpu.matmul %8, %2, %cst_22 {dimension_numbers = #tpu.dot_dimension_numbers<[1], [0], [0], [1], [0, 0, 1, 1], [], []>} : vector<8x16xf32>, vector<16x64xf32>, vector<8x64xf32> -> vector<8x64xf32>
    %21 = arith.addf %19, %20 : vector<8x64xf32>
    %22 = vector.broadcast %c0_i32 : i32 to vector<8x1xi32>
    %23 = arith.cmpi sgt, %0, %22 : vector<8x1xi32>
    %24 = vector.broadcast %11 : i32 to vector<8x1xi32>
    %25 = arith.cmpi sgt, %0, %24 : vector<8x1xi32>
    %26 = vector.extract_strided_slice %16 {offsets = [0, 0], sizes = [8, 16], strides = [1, 1]} : vector<8x64xf32> to vector<8x16xf32>
    %cst_23 = arith.constant 5.000000e-01 : f32
    %27 = vector.broadcast %cst_23 : f32 to vector<8x16xf32>
    %28 = arith.mulf %27, %26 : vector<8x16xf32>
    %29 = math.tanh %28 : vector<8x16xf32>
    %cst_24 = arith.constant 5.000000e-01 : f32
    %30 = vector.broadcast %cst_24 : f32 to vector<8x16xf32>
    %31 = arith.mulf %30, %29 : vector<8x16xf32>
    %cst_25 = arith.constant 5.000000e-01 : f32
    %32 = vector.broadcast %cst_25 : f32 to vector<8x16xf32>
    %33 = arith.addf %31, %32 : vector<8x16xf32>
    %34 = vector.extract_strided_slice %16 {offsets = [0, 16], sizes = [8, 16], strides = [1, 1]} : vector<8x64xf32> to vector<8x16xf32>
    %cst_26 = arith.constant 5.000000e-01 : f32
    %35 = vector.broadcast %cst_26 : f32 to vector<8x16xf32>
    %36 = arith.mulf %35, %34 : vector<8x16xf32>
    %37 = math.tanh %36 : vector<8x16xf32>
    %cst_27 = arith.constant 5.000000e-01 : f32
    %38 = vector.broadcast %cst_27 : f32 to vector<8x16xf32>
    %39 = arith.mulf %38, %37 : vector<8x16xf32>
    %cst_28 = arith.constant 5.000000e-01 : f32
    %40 = vector.broadcast %cst_28 : f32 to vector<8x16xf32>
    %41 = arith.addf %39, %40 : vector<8x16xf32>
    %42 = vector.extract_strided_slice %16 {offsets = [0, 32], sizes = [8, 16], strides = [1, 1]} : vector<8x64xf32> to vector<8x16xf32>
    %43 = math.tanh %42 : vector<8x16xf32>
    %44 = vector.extract_strided_slice %16 {offsets = [0, 48], sizes = [8, 16], strides = [1, 1]} : vector<8x64xf32> to vector<8x16xf32>
    %cst_29 = arith.constant 5.000000e-01 : f32
    %45 = vector.broadcast %cst_29 : f32 to vector<8x16xf32>
    %46 = arith.mulf %45, %44 : vector<8x16xf32>
    %47 = math.tanh %46 : vector<8x16xf32>
    %cst_30 = arith.constant 5.000000e-01 : f32
    %48 = vector.broadcast %cst_30 : f32 to vector<8x16xf32>
    %49 = arith.mulf %48, %47 : vector<8x16xf32>
    %cst_31 = arith.constant 5.000000e-01 : f32
    %50 = vector.broadcast %cst_31 : f32 to vector<8x16xf32>
    %51 = arith.addf %49, %50 : vector<8x16xf32>
    %52 = arith.mulf %41, %6 : vector<8x16xf32>
    %53 = arith.mulf %33, %43 : vector<8x16xf32>
    %54 = arith.addf %52, %53 : vector<8x16xf32>
    %55 = math.tanh %54 : vector<8x16xf32>
    %56 = arith.mulf %51, %55 : vector<8x16xf32>
    %57 = vector.shape_cast %23 : vector<8x1xi1> to vector<8x1xi1>
    %58 = vector.broadcast %57 : vector<8x1xi1> to vector<8x16xi1>
    %59 = arith.select %58, %56, %4 : vector<8x16xi1>, vector<8x16xf32>
    %60 = vector.shape_cast %23 : vector<8x1xi1> to vector<8x1xi1>
    %61 = vector.broadcast %60 : vector<8x1xi1> to vector<8x16xi1>
    %62 = arith.select %61, %54, %6 : vector<8x16xi1>, vector<8x16xf32>
    %cst_32 = arith.constant 0.000000e+00 : f32
    %63 = vector.shape_cast %23 : vector<8x1xi1> to vector<8x1xi1>
    %64 = vector.broadcast %63 : vector<8x1xi1> to vector<8x16xi1>
    %65 = vector.broadcast %cst_32 : f32 to vector<8x16xf32>
    %66 = arith.select %64, %56, %65 : vector<8x16xi1>, vector<8x16xf32>
    %67 = vector.extract_strided_slice %21 {offsets = [0, 0], sizes = [8, 16], strides = [1, 1]} : vector<8x64xf32> to vector<8x16xf32>
    %cst_33 = arith.constant 5.000000e-01 : f32
    %68 = vector.broadcast %cst_33 : f32 to vector<8x16xf32>
    %69 = arith.mulf %68, %67 : vector<8x16xf32>
    %70 = math.tanh %69 : vector<8x16xf32>
    %cst_34 = arith.constant 5.000000e-01 : f32
    %71 = vector.broadcast %cst_34 : f32 to vector<8x16xf32>
    %72 = arith.mulf %71, %70 : vector<8x16xf32>
    %cst_35 = arith.constant 5.000000e-01 : f32
    %73 = vector.broadcast %cst_35 : f32 to vector<8x16xf32>
    %74 = arith.addf %72, %73 : vector<8x16xf32>
    %75 = vector.extract_strided_slice %21 {offsets = [0, 16], sizes = [8, 16], strides = [1, 1]} : vector<8x64xf32> to vector<8x16xf32>
    %cst_36 = arith.constant 5.000000e-01 : f32
    %76 = vector.broadcast %cst_36 : f32 to vector<8x16xf32>
    %77 = arith.mulf %76, %75 : vector<8x16xf32>
    %78 = math.tanh %77 : vector<8x16xf32>
    %cst_37 = arith.constant 5.000000e-01 : f32
    %79 = vector.broadcast %cst_37 : f32 to vector<8x16xf32>
    %80 = arith.mulf %79, %78 : vector<8x16xf32>
    %cst_38 = arith.constant 5.000000e-01 : f32
    %81 = vector.broadcast %cst_38 : f32 to vector<8x16xf32>
    %82 = arith.addf %80, %81 : vector<8x16xf32>
    %83 = vector.extract_strided_slice %21 {offsets = [0, 32], sizes = [8, 16], strides = [1, 1]} : vector<8x64xf32> to vector<8x16xf32>
    %84 = math.tanh %83 : vector<8x16xf32>
    %85 = vector.extract_strided_slice %21 {offsets = [0, 48], sizes = [8, 16], strides = [1, 1]} : vector<8x64xf32> to vector<8x16xf32>
    %cst_39 = arith.constant 5.000000e-01 : f32
    %86 = vector.broadcast %cst_39 : f32 to vector<8x16xf32>
    %87 = arith.mulf %86, %85 : vector<8x16xf32>
    %88 = math.tanh %87 : vector<8x16xf32>
    %cst_40 = arith.constant 5.000000e-01 : f32
    %89 = vector.broadcast %cst_40 : f32 to vector<8x16xf32>
    %90 = arith.mulf %89, %88 : vector<8x16xf32>
    %cst_41 = arith.constant 5.000000e-01 : f32
    %91 = vector.broadcast %cst_41 : f32 to vector<8x16xf32>
    %92 = arith.addf %90, %91 : vector<8x16xf32>
    %93 = arith.mulf %82, %10 : vector<8x16xf32>
    %94 = arith.mulf %74, %84 : vector<8x16xf32>
    %95 = arith.addf %93, %94 : vector<8x16xf32>
    %96 = math.tanh %95 : vector<8x16xf32>
    %97 = arith.mulf %92, %96 : vector<8x16xf32>
    %98 = vector.shape_cast %25 : vector<8x1xi1> to vector<8x1xi1>
    %99 = vector.broadcast %98 : vector<8x1xi1> to vector<8x16xi1>
    %100 = arith.select %99, %97, %8 : vector<8x16xi1>, vector<8x16xf32>
    %101 = vector.shape_cast %25 : vector<8x1xi1> to vector<8x1xi1>
    %102 = vector.broadcast %101 : vector<8x1xi1> to vector<8x16xi1>
    %103 = arith.select %102, %95, %10 : vector<8x16xi1>, vector<8x16xf32>
    %cst_42 = arith.constant 0.000000e+00 : f32
    %104 = vector.shape_cast %25 : vector<8x1xi1> to vector<8x1xi1>
    %105 = vector.broadcast %104 : vector<8x1xi1> to vector<8x16xi1>
    %106 = vector.broadcast %cst_42 : f32 to vector<8x16xf32>
    %107 = arith.select %105, %97, %106 : vector<8x16xi1>, vector<8x16xf32>
    %c0_43 = arith.constant 0 : index
    %108 = arith.index_cast %c0_i32 : i32 to index
    %c0_44 = arith.constant 0 : index
    %c0_45 = arith.constant 0 : index
    %109 = vector.load %arg7[%c0_43, %108, %c0_44, %c0_45] : memref<2x8x8x16xf32, #tpu.memory_space<vmem>>, vector<1x1x8x16xf32>
    %110 = vector.shape_cast %109 : vector<1x1x8x16xf32> to vector<8x16xf32>
    %111 = vector.shape_cast %66 : vector<8x16xf32> to vector<1x1x8x16xf32>
    tpu.vector_store %arg7[%c0_43, %108, %c0_44, %c0_45], %111 {strides = array<i32>} : memref<2x8x8x16xf32, #tpu.memory_space<vmem>>, vector<1x1x8x16xf32>,
    %c1_46 = arith.constant 1 : index
    %112 = arith.index_cast %11 : i32 to index
    %c0_47 = arith.constant 0 : index
    %c0_48 = arith.constant 0 : index
    %113 = vector.load %arg7[%c1_46, %112, %c0_47, %c0_48] : memref<2x8x8x16xf32, #tpu.memory_space<vmem>>, vector<1x1x8x16xf32>
    %114 = vector.shape_cast %113 : vector<1x1x8x16xf32> to vector<8x16xf32>
    %115 = vector.shape_cast %107 : vector<8x16xf32> to vector<1x1x8x16xf32>
    tpu.vector_store %arg7[%c1_46, %112, %c0_47, %c0_48], %115 {strides = array<i32>} : memref<2x8x8x16xf32, #tpu.memory_space<vmem>>, vector<1x1x8x16xf32>,
    %c1_i32 = arith.constant 1 : i32
    %c7_i32_49 = arith.constant 7 : i32
    %116 = arith.subi %c7_i32_49, %c1_i32 : i32
    %c0_50 = arith.constant 0 : index
    %117 = arith.index_cast %c1_i32 : i32 to index
    %c0_51 = arith.constant 0 : index
    %c0_52 = arith.constant 0 : index
    %118 = vector.load %arg2[%c0_50, %117, %c0_51, %c0_52] : memref<2x8x8x64xf32, #tpu.memory_space<vmem>>, vector<1x1x8x64xf32>
    %119 = vector.shape_cast %118 : vector<1x1x8x64xf32> to vector<8x64xf32>
    %cst_53 = arith.constant dense<0.000000e+00> : vector<8x64xf32>
    %120 = tpu.matmul %59, %1, %cst_53 {dimension_numbers = #tpu.dot_dimension_numbers<[1], [0], [0], [1], [0, 0, 1, 1], [], []>} : vector<8x16xf32>, vector<16x64xf32>, vector<8x64xf32> -> vector<8x64xf32>
    %121 = arith.addf %119, %120 : vector<8x64xf32>
    %c1_54 = arith.constant 1 : index
    %122 = arith.index_cast %116 : i32 to index
    %c0_55 = arith.constant 0 : index
    %c0_56 = arith.constant 0 : index
    %123 = vector.load %arg2[%c1_54, %122, %c0_55, %c0_56] : memref<2x8x8x64xf32, #tpu.memory_space<vmem>>, vector<1x1x8x64xf32>
    %124 = vector.shape_cast %123 : vector<1x1x8x64xf32> to vector<8x64xf32>
    %cst_57 = arith.constant dense<0.000000e+00> : vector<8x64xf32>
    %125 = tpu.matmul %100, %2, %cst_57 {dimension_numbers = #tpu.dot_dimension_numbers<[1], [0], [0], [1], [0, 0, 1, 1], [], []>} : vector<8x16xf32>, vector<16x64xf32>, vector<8x64xf32> -> vector<8x64xf32>
    %126 = arith.addf %124, %125 : vector<8x64xf32>
    %127 = vector.broadcast %c1_i32 : i32 to vector<8x1xi32>
    %128 = arith.cmpi sgt, %0, %127 : vector<8x1xi32>
    %129 = vector.broadcast %116 : i32 to vector<8x1xi32>
    %130 = arith.cmpi sgt, %0, %129 : vector<8x1xi32>
    %131 = vector.extract_strided_slice %121 {offsets = [0, 0], sizes = [8, 16], strides = [1, 1]} : vector<8x64xf32> to vector<8x16xf32>
    %cst_58 = arith.constant 5.000000e-01 : f32
    %132 = vector.broadcast %cst_58 : f32 to vector<8x16xf32>
    %133 = arith.mulf %132, %131 : vector<8x16xf32>
    %134 = math.tanh %133 : vector<8x16xf32>
    %cst_59 = arith.constant 5.000000e-01 : f32
    %135 = vector.broadcast %cst_59 : f32 to vector<8x16xf32>
    %136 = arith.mulf %135, %134 : vector<8x16xf32>
    %cst_60 = arith.constant 5.000000e-01 : f32
    %137 = vector.broadcast %cst_60 : f32 to vector<8x16xf32>
    %138 = arith.addf %136, %137 : vector<8x16xf32>
    %139 = vector.extract_strided_slice %121 {offsets = [0, 16], sizes = [8, 16], strides = [1, 1]} : vector<8x64xf32> to vector<8x16xf32>
    %cst_61 = arith.constant 5.000000e-01 : f32
    %140 = vector.broadcast %cst_61 : f32 to vector<8x16xf32>
    %141 = arith.mulf %140, %139 : vector<8x16xf32>
    %142 = math.tanh %141 : vector<8x16xf32>
    %cst_62 = arith.constant 5.000000e-01 : f32
    %143 = vector.broadcast %cst_62 : f32 to vector<8x16xf32>
    %144 = arith.mulf %143, %142 : vector<8x16xf32>
    %cst_63 = arith.constant 5.000000e-01 : f32
    %145 = vector.broadcast %cst_63 : f32 to vector<8x16xf32>
    %146 = arith.addf %144, %145 : vector<8x16xf32>
    %147 = vector.extract_strided_slice %121 {offsets = [0, 32], sizes = [8, 16], strides = [1, 1]} : vector<8x64xf32> to vector<8x16xf32>
    %148 = math.tanh %147 : vector<8x16xf32>
    %149 = vector.extract_strided_slice %121 {offsets = [0, 48], sizes = [8, 16], strides = [1, 1]} : vector<8x64xf32> to vector<8x16xf32>
    %cst_64 = arith.constant 5.000000e-01 : f32
    %150 = vector.broadcast %cst_64 : f32 to vector<8x16xf32>
    %151 = arith.mulf %150, %149 : vector<8x16xf32>
    %152 = math.tanh %151 : vector<8x16xf32>
    %cst_65 = arith.constant 5.000000e-01 : f32
    %153 = vector.broadcast %cst_65 : f32 to vector<8x16xf32>
    %154 = arith.mulf %153, %152 : vector<8x16xf32>
    %cst_66 = arith.constant 5.000000e-01 : f32
    %155 = vector.broadcast %cst_66 : f32 to vector<8x16xf32>
    %156 = arith.addf %154, %155 : vector<8x16xf32>
    %157 = arith.mulf %146, %62 : vector<8x16xf32>
    %158 = arith.mulf %138, %148 : vector<8x16xf32>
    %159 = arith.addf %157, %158 : vector<8x16xf32>
    %160 = math.tanh %159 : vector<8x16xf32>
    %161 = arith.mulf %156, %160 : vector<8x16xf32>
    %162 = vector.shape_cast %128 : vector<8x1xi1> to vector<8x1xi1>
    %163 = vector.broadcast %162 : vector<8x1xi1> to vector<8x16xi1>
    %164 = arith.select %163, %161, %59 : vector<8x16xi1>, vector<8x16xf32>
    %165 = vector.shape_cast %128 : vector<8x1xi1> to vector<8x1xi1>
    %166 = vector.broadcast %165 : vector<8x1xi1> to vector<8x16xi1>
    %167 = arith.select %166, %159, %62 : vector<8x16xi1>, vector<8x16xf32>
    %cst_67 = arith.constant 0.000000e+00 : f32
    %168 = vector.shape_cast %128 : vector<8x1xi1> to vector<8x1xi1>
    %169 = vector.broadcast %168 : vector<8x1xi1> to vector<8x16xi1>
    %170 = vector.broadcast %cst_67 : f32 to vector<8x16xf32>
    %171 = arith.select %169, %161, %170 : vector<8x16xi1>, vector<8x16xf32>
    %172 = vector.extract_strided_slice %126 {offsets = [0, 0], sizes = [8, 16], strides = [1, 1]} : vector<8x64xf32> to vector<8x16xf32>
    %cst_68 = arith.constant 5.000000e-01 : f32
    %173 = vector.broadcast %cst_68 : f32 to vector<8x16xf32>
    %174 = arith.mulf %173, %172 : vector<8x16xf32>
    %175 = math.tanh %174 : vector<8x16xf32>
    %cst_69 = arith.constant 5.000000e-01 : f32
    %176 = vector.broadcast %cst_69 : f32 to vector<8x16xf32>
    %177 = arith.mulf %176, %175 : vector<8x16xf32>
    %cst_70 = arith.constant 5.000000e-01 : f32
    %178 = vector.broadcast %cst_70 : f32 to vector<8x16xf32>
    %179 = arith.addf %177, %178 : vector<8x16xf32>
    %180 = vector.extract_strided_slice %126 {offsets = [0, 16], sizes = [8, 16], strides = [1, 1]} : vector<8x64xf32> to vector<8x16xf32>
    %cst_71 = arith.constant 5.000000e-01 : f32
    %181 = vector.broadcast %cst_71 : f32 to vector<8x16xf32>
    %182 = arith.mulf %181, %180 : vector<8x16xf32>
    %183 = math.tanh %182 : vector<8x16xf32>
    %cst_72 = arith.constant 5.000000e-01 : f32
    %184 = vector.broadcast %cst_72 : f32 to vector<8x16xf32>
    %185 = arith.mulf %184, %183 : vector<8x16xf32>
    %cst_73 = arith.constant 5.000000e-01 : f32
    %186 = vector.broadcast %cst_73 : f32 to vector<8x16xf32>
    %187 = arith.addf %185, %186 : vector<8x16xf32>
    %188 = vector.extract_strided_slice %126 {offsets = [0, 32], sizes = [8, 16], strides = [1, 1]} : vector<8x64xf32> to vector<8x16xf32>
    %189 = math.tanh %188 : vector<8x16xf32>
    %190 = vector.extract_strided_slice %126 {offsets = [0, 48], sizes = [8, 16], strides = [1, 1]} : vector<8x64xf32> to vector<8x16xf32>
    %cst_74 = arith.constant 5.000000e-01 : f32
    %191 = vector.broadcast %cst_74 : f32 to vector<8x16xf32>
    %192 = arith.mulf %191, %190 : vector<8x16xf32>
    %193 = math.tanh %192 : vector<8x16xf32>
    %cst_75 = arith.constant 5.000000e-01 : f32
    %194 = vector.broadcast %cst_75 : f32 to vector<8x16xf32>
    %195 = arith.mulf %194, %193 : vector<8x16xf32>
    %cst_76 = arith.constant 5.000000e-01 : f32
    %196 = vector.broadcast %cst_76 : f32 to vector<8x16xf32>
    %197 = arith.addf %195, %196 : vector<8x16xf32>
    %198 = arith.mulf %187, %103 : vector<8x16xf32>
    %199 = arith.mulf %179, %189 : vector<8x16xf32>
    %200 = arith.addf %198, %199 : vector<8x16xf32>
    %201 = math.tanh %200 : vector<8x16xf32>
    %202 = arith.mulf %197, %201 : vector<8x16xf32>
    %203 = vector.shape_cast %130 : vector<8x1xi1> to vector<8x1xi1>
    %204 = vector.broadcast %203 : vector<8x1xi1> to vector<8x16xi1>
    %205 = arith.select %204, %202, %100 : vector<8x16xi1>, vector<8x16xf32>
    %206 = vector.shape_cast %130 : vector<8x1xi1> to vector<8x1xi1>
    %207 = vector.broadcast %206 : vector<8x1xi1> to vector<8x16xi1>
    %208 = arith.select %207, %200, %103 : vector<8x16xi1>, vector<8x16xf32>
    %cst_77 = arith.constant 0.000000e+00 : f32
    %209 = vector.shape_cast %130 : vector<8x1xi1> to vector<8x1xi1>
    %210 = vector.broadcast %209 : vector<8x1xi1> to vector<8x16xi1>
    %211 = vector.broadcast %cst_77 : f32 to vector<8x16xf32>
    %212 = arith.select %210, %202, %211 : vector<8x16xi1>, vector<8x16xf32>
    %c0_78 = arith.constant 0 : index
    %213 = arith.index_cast %c1_i32 : i32 to index
    %c0_79 = arith.constant 0 : index
    %c0_80 = arith.constant 0 : index
    %214 = vector.load %arg7[%c0_78, %213, %c0_79, %c0_80] : memref<2x8x8x16xf32, #tpu.memory_space<vmem>>, vector<1x1x8x16xf32>
    %215 = vector.shape_cast %214 : vector<1x1x8x16xf32> to vector<8x16xf32>
    %216 = vector.shape_cast %171 : vector<8x16xf32> to vector<1x1x8x16xf32>
    tpu.vector_store %arg7[%c0_78, %213, %c0_79, %c0_80], %216 {strides = array<i32>} : memref<2x8x8x16xf32, #tpu.memory_space<vmem>>, vector<1x1x8x16xf32>,
    %c1_81 = arith.constant 1 : index
    %217 = arith.index_cast %116 : i32 to index
    %c0_82 = arith.constant 0 : index
    %c0_83 = arith.constant 0 : index
    %218 = vector.load %arg7[%c1_81, %217, %c0_82, %c0_83] : memref<2x8x8x16xf32, #tpu.memory_space<vmem>>, vector<1x1x8x16xf32>
    %219 = vector.shape_cast %218 : vector<1x1x8x16xf32> to vector<8x16xf32>
    %220 = vector.shape_cast %212 : vector<8x16xf32> to vector<1x1x8x16xf32>
    tpu.vector_store %arg7[%c1_81, %217, %c0_82, %c0_83], %220 {strides = array<i32>} : memref<2x8x8x16xf32, #tpu.memory_space<vmem>>, vector<1x1x8x16xf32>,
    %c2_i32 = arith.constant 2 : i32
    %c7_i32_84 = arith.constant 7 : i32
    %221 = arith.subi %c7_i32_84, %c2_i32 : i32
    %c0_85 = arith.constant 0 : index
    %222 = arith.index_cast %c2_i32 : i32 to index
    %c0_86 = arith.constant 0 : index
    %c0_87 = arith.constant 0 : index
    %223 = vector.load %arg2[%c0_85, %222, %c0_86, %c0_87] : memref<2x8x8x64xf32, #tpu.memory_space<vmem>>, vector<1x1x8x64xf32>
    %224 = vector.shape_cast %223 : vector<1x1x8x64xf32> to vector<8x64xf32>
    %cst_88 = arith.constant dense<0.000000e+00> : vector<8x64xf32>
    %225 = tpu.matmul %164, %1, %cst_88 {dimension_numbers = #tpu.dot_dimension_numbers<[1], [0], [0], [1], [0, 0, 1, 1], [], []>} : vector<8x16xf32>, vector<16x64xf32>, vector<8x64xf32> -> vector<8x64xf32>
    %226 = arith.addf %224, %225 : vector<8x64xf32>
    %c1_89 = arith.constant 1 : index
    %227 = arith.index_cast %221 : i32 to index
    %c0_90 = arith.constant 0 : index
    %c0_91 = arith.constant 0 : index
    %228 = vector.load %arg2[%c1_89, %227, %c0_90, %c0_91] : memref<2x8x8x64xf32, #tpu.memory_space<vmem>>, vector<1x1x8x64xf32>
    %229 = vector.shape_cast %228 : vector<1x1x8x64xf32> to vector<8x64xf32>
    %cst_92 = arith.constant dense<0.000000e+00> : vector<8x64xf32>
    %230 = tpu.matmul %205, %2, %cst_92 {dimension_numbers = #tpu.dot_dimension_numbers<[1], [0], [0], [1], [0, 0, 1, 1], [], []>} : vector<8x16xf32>, vector<16x64xf32>, vector<8x64xf32> -> vector<8x64xf32>
    %231 = arith.addf %229, %230 : vector<8x64xf32>
    %232 = vector.broadcast %c2_i32 : i32 to vector<8x1xi32>
    %233 = arith.cmpi sgt, %0, %232 : vector<8x1xi32>
    %234 = vector.broadcast %221 : i32 to vector<8x1xi32>
    %235 = arith.cmpi sgt, %0, %234 : vector<8x1xi32>
    %236 = vector.extract_strided_slice %226 {offsets = [0, 0], sizes = [8, 16], strides = [1, 1]} : vector<8x64xf32> to vector<8x16xf32>
    %cst_93 = arith.constant 5.000000e-01 : f32
    %237 = vector.broadcast %cst_93 : f32 to vector<8x16xf32>
    %238 = arith.mulf %237, %236 : vector<8x16xf32>
    %239 = math.tanh %238 : vector<8x16xf32>
    %cst_94 = arith.constant 5.000000e-01 : f32
    %240 = vector.broadcast %cst_94 : f32 to vector<8x16xf32>
    %241 = arith.mulf %240, %239 : vector<8x16xf32>
    %cst_95 = arith.constant 5.000000e-01 : f32
    %242 = vector.broadcast %cst_95 : f32 to vector<8x16xf32>
    %243 = arith.addf %241, %242 : vector<8x16xf32>
    %244 = vector.extract_strided_slice %226 {offsets = [0, 16], sizes = [8, 16], strides = [1, 1]} : vector<8x64xf32> to vector<8x16xf32>
    %cst_96 = arith.constant 5.000000e-01 : f32
    %245 = vector.broadcast %cst_96 : f32 to vector<8x16xf32>
    %246 = arith.mulf %245, %244 : vector<8x16xf32>
    %247 = math.tanh %246 : vector<8x16xf32>
    %cst_97 = arith.constant 5.000000e-01 : f32
    %248 = vector.broadcast %cst_97 : f32 to vector<8x16xf32>
    %249 = arith.mulf %248, %247 : vector<8x16xf32>
    %cst_98 = arith.constant 5.000000e-01 : f32
    %250 = vector.broadcast %cst_98 : f32 to vector<8x16xf32>
    %251 = arith.addf %249, %250 : vector<8x16xf32>
    %252 = vector.extract_strided_slice %226 {offsets = [0, 32], sizes = [8, 16], strides = [1, 1]} : vector<8x64xf32> to vector<8x16xf32>
    %253 = math.tanh %252 : vector<8x16xf32>
    %254 = vector.extract_strided_slice %226 {offsets = [0, 48], sizes = [8, 16], strides = [1, 1]} : vector<8x64xf32> to vector<8x16xf32>
    %cst_99 = arith.constant 5.000000e-01 : f32
    %255 = vector.broadcast %cst_99 : f32 to vector<8x16xf32>
    %256 = arith.mulf %255, %254 : vector<8x16xf32>
    %257 = math.tanh %256 : vector<8x16xf32>
    %cst_100 = arith.constant 5.000000e-01 : f32
    %258 = vector.broadcast %cst_100 : f32 to vector<8x16xf32>
    %259 = arith.mulf %258, %257 : vector<8x16xf32>
    %cst_101 = arith.constant 5.000000e-01 : f32
    %260 = vector.broadcast %cst_101 : f32 to vector<8x16xf32>
    %261 = arith.addf %259, %260 : vector<8x16xf32>
    %262 = arith.mulf %251, %167 : vector<8x16xf32>
    %263 = arith.mulf %243, %253 : vector<8x16xf32>
    %264 = arith.addf %262, %263 : vector<8x16xf32>
    %265 = math.tanh %264 : vector<8x16xf32>
    %266 = arith.mulf %261, %265 : vector<8x16xf32>
    %267 = vector.shape_cast %233 : vector<8x1xi1> to vector<8x1xi1>
    %268 = vector.broadcast %267 : vector<8x1xi1> to vector<8x16xi1>
    %269 = arith.select %268, %266, %164 : vector<8x16xi1>, vector<8x16xf32>
    %270 = vector.shape_cast %233 : vector<8x1xi1> to vector<8x1xi1>
    %271 = vector.broadcast %270 : vector<8x1xi1> to vector<8x16xi1>
    %272 = arith.select %271, %264, %167 : vector<8x16xi1>, vector<8x16xf32>
    %cst_102 = arith.constant 0.000000e+00 : f32
    %273 = vector.shape_cast %233 : vector<8x1xi1> to vector<8x1xi1>
    %274 = vector.broadcast %273 : vector<8x1xi1> to vector<8x16xi1>
    %275 = vector.broadcast %cst_102 : f32 to vector<8x16xf32>
    %276 = arith.select %274, %266, %275 : vector<8x16xi1>, vector<8x16xf32>
    %277 = vector.extract_strided_slice %231 {offsets = [0, 0], sizes = [8, 16], strides = [1, 1]} : vector<8x64xf32> to vector<8x16xf32>
    %cst_103 = arith.constant 5.000000e-01 : f32
    %278 = vector.broadcast %cst_103 : f32 to vector<8x16xf32>
    %279 = arith.mulf %278, %277 : vector<8x16xf32>
    %280 = math.tanh %279 : vector<8x16xf32>
    %cst_104 = arith.constant 5.000000e-01 : f32
    %281 = vector.broadcast %cst_104 : f32 to vector<8x16xf32>
    %282 = arith.mulf %281, %280 : vector<8x16xf32>
    %cst_105 = arith.constant 5.000000e-01 : f32
    %283 = vector.broadcast %cst_105 : f32 to vector<8x16xf32>
    %284 = arith.addf %282, %283 : vector<8x16xf32>
    %285 = vector.extract_strided_slice %231 {offsets = [0, 16], sizes = [8, 16], strides = [1, 1]} : vector<8x64xf32> to vector<8x16xf32>
    %cst_106 = arith.constant 5.000000e-01 : f32
    %286 = vector.broadcast %cst_106 : f32 to vector<8x16xf32>
    %287 = arith.mulf %286, %285 : vector<8x16xf32>
    %288 = math.tanh %287 : vector<8x16xf32>
    %cst_107 = arith.constant 5.000000e-01 : f32
    %289 = vector.broadcast %cst_107 : f32 to vector<8x16xf32>
    %290 = arith.mulf %289, %288 : vector<8x16xf32>
    %cst_108 = arith.constant 5.000000e-01 : f32
    %291 = vector.broadcast %cst_108 : f32 to vector<8x16xf32>
    %292 = arith.addf %290, %291 : vector<8x16xf32>
    %293 = vector.extract_strided_slice %231 {offsets = [0, 32], sizes = [8, 16], strides = [1, 1]} : vector<8x64xf32> to vector<8x16xf32>
    %294 = math.tanh %293 : vector<8x16xf32>
    %295 = vector.extract_strided_slice %231 {offsets = [0, 48], sizes = [8, 16], strides = [1, 1]} : vector<8x64xf32> to vector<8x16xf32>
    %cst_109 = arith.constant 5.000000e-01 : f32
    %296 = vector.broadcast %cst_109 : f32 to vector<8x16xf32>
    %297 = arith.mulf %296, %295 : vector<8x16xf32>
    %298 = math.tanh %297 : vector<8x16xf32>
    %cst_110 = arith.constant 5.000000e-01 : f32
    %299 = vector.broadcast %cst_110 : f32 to vector<8x16xf32>
    %300 = arith.mulf %299, %298 : vector<8x16xf32>
    %cst_111 = arith.constant 5.000000e-01 : f32
    %301 = vector.broadcast %cst_111 : f32 to vector<8x16xf32>
    %302 = arith.addf %300, %301 : vector<8x16xf32>
    %303 = arith.mulf %292, %208 : vector<8x16xf32>
    %304 = arith.mulf %284, %294 : vector<8x16xf32>
    %305 = arith.addf %303, %304 : vector<8x16xf32>
    %306 = math.tanh %305 : vector<8x16xf32>
    %307 = arith.mulf %302, %306 : vector<8x16xf32>
    %308 = vector.shape_cast %235 : vector<8x1xi1> to vector<8x1xi1>
    %309 = vector.broadcast %308 : vector<8x1xi1> to vector<8x16xi1>
    %310 = arith.select %309, %307, %205 : vector<8x16xi1>, vector<8x16xf32>
    %311 = vector.shape_cast %235 : vector<8x1xi1> to vector<8x1xi1>
    %312 = vector.broadcast %311 : vector<8x1xi1> to vector<8x16xi1>
    %313 = arith.select %312, %305, %208 : vector<8x16xi1>, vector<8x16xf32>
    %cst_112 = arith.constant 0.000000e+00 : f32
    %314 = vector.shape_cast %235 : vector<8x1xi1> to vector<8x1xi1>
    %315 = vector.broadcast %314 : vector<8x1xi1> to vector<8x16xi1>
    %316 = vector.broadcast %cst_112 : f32 to vector<8x16xf32>
    %317 = arith.select %315, %307, %316 : vector<8x16xi1>, vector<8x16xf32>
    %c0_113 = arith.constant 0 : index
    %318 = arith.index_cast %c2_i32 : i32 to index
    %c0_114 = arith.constant 0 : index
    %c0_115 = arith.constant 0 : index
    %319 = vector.load %arg7[%c0_113, %318, %c0_114, %c0_115] : memref<2x8x8x16xf32, #tpu.memory_space<vmem>>, vector<1x1x8x16xf32>
    %320 = vector.shape_cast %319 : vector<1x1x8x16xf32> to vector<8x16xf32>
    %321 = vector.shape_cast %276 : vector<8x16xf32> to vector<1x1x8x16xf32>
    tpu.vector_store %arg7[%c0_113, %318, %c0_114, %c0_115], %321 {strides = array<i32>} : memref<2x8x8x16xf32, #tpu.memory_space<vmem>>, vector<1x1x8x16xf32>,
    %c1_116 = arith.constant 1 : index
    %322 = arith.index_cast %221 : i32 to index
    %c0_117 = arith.constant 0 : index
    %c0_118 = arith.constant 0 : index
    %323 = vector.load %arg7[%c1_116, %322, %c0_117, %c0_118] : memref<2x8x8x16xf32, #tpu.memory_space<vmem>>, vector<1x1x8x16xf32>
    %324 = vector.shape_cast %323 : vector<1x1x8x16xf32> to vector<8x16xf32>
    %325 = vector.shape_cast %317 : vector<8x16xf32> to vector<1x1x8x16xf32>
    tpu.vector_store %arg7[%c1_116, %322, %c0_117, %c0_118], %325 {strides = array<i32>} : memref<2x8x8x16xf32, #tpu.memory_space<vmem>>, vector<1x1x8x16xf32>,
    %c3_i32 = arith.constant 3 : i32
    %c7_i32_119 = arith.constant 7 : i32
    %326 = arith.subi %c7_i32_119, %c3_i32 : i32
    %c0_120 = arith.constant 0 : index
    %327 = arith.index_cast %c3_i32 : i32 to index
    %c0_121 = arith.constant 0 : index
    %c0_122 = arith.constant 0 : index
    %328 = vector.load %arg2[%c0_120, %327, %c0_121, %c0_122] : memref<2x8x8x64xf32, #tpu.memory_space<vmem>>, vector<1x1x8x64xf32>
    %329 = vector.shape_cast %328 : vector<1x1x8x64xf32> to vector<8x64xf32>
    %cst_123 = arith.constant dense<0.000000e+00> : vector<8x64xf32>
    %330 = tpu.matmul %269, %1, %cst_123 {dimension_numbers = #tpu.dot_dimension_numbers<[1], [0], [0], [1], [0, 0, 1, 1], [], []>} : vector<8x16xf32>, vector<16x64xf32>, vector<8x64xf32> -> vector<8x64xf32>
    %331 = arith.addf %329, %330 : vector<8x64xf32>
    %c1_124 = arith.constant 1 : index
    %332 = arith.index_cast %326 : i32 to index
    %c0_125 = arith.constant 0 : index
    %c0_126 = arith.constant 0 : index
    %333 = vector.load %arg2[%c1_124, %332, %c0_125, %c0_126] : memref<2x8x8x64xf32, #tpu.memory_space<vmem>>, vector<1x1x8x64xf32>
    %334 = vector.shape_cast %333 : vector<1x1x8x64xf32> to vector<8x64xf32>
    %cst_127 = arith.constant dense<0.000000e+00> : vector<8x64xf32>
    %335 = tpu.matmul %310, %2, %cst_127 {dimension_numbers = #tpu.dot_dimension_numbers<[1], [0], [0], [1], [0, 0, 1, 1], [], []>} : vector<8x16xf32>, vector<16x64xf32>, vector<8x64xf32> -> vector<8x64xf32>
    %336 = arith.addf %334, %335 : vector<8x64xf32>
    %337 = vector.broadcast %c3_i32 : i32 to vector<8x1xi32>
    %338 = arith.cmpi sgt, %0, %337 : vector<8x1xi32>
    %339 = vector.broadcast %326 : i32 to vector<8x1xi32>
    %340 = arith.cmpi sgt, %0, %339 : vector<8x1xi32>
    %341 = vector.extract_strided_slice %331 {offsets = [0, 0], sizes = [8, 16], strides = [1, 1]} : vector<8x64xf32> to vector<8x16xf32>
    %cst_128 = arith.constant 5.000000e-01 : f32
    %342 = vector.broadcast %cst_128 : f32 to vector<8x16xf32>
    %343 = arith.mulf %342, %341 : vector<8x16xf32>
    %344 = math.tanh %343 : vector<8x16xf32>
    %cst_129 = arith.constant 5.000000e-01 : f32
    %345 = vector.broadcast %cst_129 : f32 to vector<8x16xf32>
    %346 = arith.mulf %345, %344 : vector<8x16xf32>
    %cst_130 = arith.constant 5.000000e-01 : f32
    %347 = vector.broadcast %cst_130 : f32 to vector<8x16xf32>
    %348 = arith.addf %346, %347 : vector<8x16xf32>
    %349 = vector.extract_strided_slice %331 {offsets = [0, 16], sizes = [8, 16], strides = [1, 1]} : vector<8x64xf32> to vector<8x16xf32>
    %cst_131 = arith.constant 5.000000e-01 : f32
    %350 = vector.broadcast %cst_131 : f32 to vector<8x16xf32>
    %351 = arith.mulf %350, %349 : vector<8x16xf32>
    %352 = math.tanh %351 : vector<8x16xf32>
    %cst_132 = arith.constant 5.000000e-01 : f32
    %353 = vector.broadcast %cst_132 : f32 to vector<8x16xf32>
    %354 = arith.mulf %353, %352 : vector<8x16xf32>
    %cst_133 = arith.constant 5.000000e-01 : f32
    %355 = vector.broadcast %cst_133 : f32 to vector<8x16xf32>
    %356 = arith.addf %354, %355 : vector<8x16xf32>
    %357 = vector.extract_strided_slice %331 {offsets = [0, 32], sizes = [8, 16], strides = [1, 1]} : vector<8x64xf32> to vector<8x16xf32>
    %358 = math.tanh %357 : vector<8x16xf32>
    %359 = vector.extract_strided_slice %331 {offsets = [0, 48], sizes = [8, 16], strides = [1, 1]} : vector<8x64xf32> to vector<8x16xf32>
    %cst_134 = arith.constant 5.000000e-01 : f32
    %360 = vector.broadcast %cst_134 : f32 to vector<8x16xf32>
    %361 = arith.mulf %360, %359 : vector<8x16xf32>
    %362 = math.tanh %361 : vector<8x16xf32>
    %cst_135 = arith.constant 5.000000e-01 : f32
    %363 = vector.broadcast %cst_135 : f32 to vector<8x16xf32>
    %364 = arith.mulf %363, %362 : vector<8x16xf32>
    %cst_136 = arith.constant 5.000000e-01 : f32
    %365 = vector.broadcast %cst_136 : f32 to vector<8x16xf32>
    %366 = arith.addf %364, %365 : vector<8x16xf32>
    %367 = arith.mulf %356, %272 : vector<8x16xf32>
    %368 = arith.mulf %348, %358 : vector<8x16xf32>
    %369 = arith.addf %367, %368 : vector<8x16xf32>
    %370 = math.tanh %369 : vector<8x16xf32>
    %371 = arith.mulf %366, %370 : vector<8x16xf32>
    %372 = vector.shape_cast %338 : vector<8x1xi1> to vector<8x1xi1>
    %373 = vector.broadcast %372 : vector<8x1xi1> to vector<8x16xi1>
    %374 = arith.select %373, %371, %269 : vector<8x16xi1>, vector<8x16xf32>
    %375 = vector.shape_cast %338 : vector<8x1xi1> to vector<8x1xi1>
    %376 = vector.broadcast %375 : vector<8x1xi1> to vector<8x16xi1>
    %377 = arith.select %376, %369, %272 : vector<8x16xi1>, vector<8x16xf32>
    %cst_137 = arith.constant 0.000000e+00 : f32
    %378 = vector.shape_cast %338 : vector<8x1xi1> to vector<8x1xi1>
    %379 = vector.broadcast %378 : vector<8x1xi1> to vector<8x16xi1>
    %380 = vector.broadcast %cst_137 : f32 to vector<8x16xf32>
    %381 = arith.select %379, %371, %380 : vector<8x16xi1>, vector<8x16xf32>
    %382 = vector.extract_strided_slice %336 {offsets = [0, 0], sizes = [8, 16], strides = [1, 1]} : vector<8x64xf32> to vector<8x16xf32>
    %cst_138 = arith.constant 5.000000e-01 : f32
    %383 = vector.broadcast %cst_138 : f32 to vector<8x16xf32>
    %384 = arith.mulf %383, %382 : vector<8x16xf32>
    %385 = math.tanh %384 : vector<8x16xf32>
    %cst_139 = arith.constant 5.000000e-01 : f32
    %386 = vector.broadcast %cst_139 : f32 to vector<8x16xf32>
    %387 = arith.mulf %386, %385 : vector<8x16xf32>
    %cst_140 = arith.constant 5.000000e-01 : f32
    %388 = vector.broadcast %cst_140 : f32 to vector<8x16xf32>
    %389 = arith.addf %387, %388 : vector<8x16xf32>
    %390 = vector.extract_strided_slice %336 {offsets = [0, 16], sizes = [8, 16], strides = [1, 1]} : vector<8x64xf32> to vector<8x16xf32>
    %cst_141 = arith.constant 5.000000e-01 : f32
    %391 = vector.broadcast %cst_141 : f32 to vector<8x16xf32>
    %392 = arith.mulf %391, %390 : vector<8x16xf32>
    %393 = math.tanh %392 : vector<8x16xf32>
    %cst_142 = arith.constant 5.000000e-01 : f32
    %394 = vector.broadcast %cst_142 : f32 to vector<8x16xf32>
    %395 = arith.mulf %394, %393 : vector<8x16xf32>
    %cst_143 = arith.constant 5.000000e-01 : f32
    %396 = vector.broadcast %cst_143 : f32 to vector<8x16xf32>
    %397 = arith.addf %395, %396 : vector<8x16xf32>
    %398 = vector.extract_strided_slice %336 {offsets = [0, 32], sizes = [8, 16], strides = [1, 1]} : vector<8x64xf32> to vector<8x16xf32>
    %399 = math.tanh %398 : vector<8x16xf32>
    %400 = vector.extract_strided_slice %336 {offsets = [0, 48], sizes = [8, 16], strides = [1, 1]} : vector<8x64xf32> to vector<8x16xf32>
    %cst_144 = arith.constant 5.000000e-01 : f32
    %401 = vector.broadcast %cst_144 : f32 to vector<8x16xf32>
    %402 = arith.mulf %401, %400 : vector<8x16xf32>
    %403 = math.tanh %402 : vector<8x16xf32>
    %cst_145 = arith.constant 5.000000e-01 : f32
    %404 = vector.broadcast %cst_145 : f32 to vector<8x16xf32>
    %405 = arith.mulf %404, %403 : vector<8x16xf32>
    %cst_146 = arith.constant 5.000000e-01 : f32
    %406 = vector.broadcast %cst_146 : f32 to vector<8x16xf32>
    %407 = arith.addf %405, %406 : vector<8x16xf32>
    %408 = arith.mulf %397, %313 : vector<8x16xf32>
    %409 = arith.mulf %389, %399 : vector<8x16xf32>
    %410 = arith.addf %408, %409 : vector<8x16xf32>
    %411 = math.tanh %410 : vector<8x16xf32>
    %412 = arith.mulf %407, %411 : vector<8x16xf32>
    %413 = vector.shape_cast %340 : vector<8x1xi1> to vector<8x1xi1>
    %414 = vector.broadcast %413 : vector<8x1xi1> to vector<8x16xi1>
    %415 = arith.select %414, %412, %310 : vector<8x16xi1>, vector<8x16xf32>
    %416 = vector.shape_cast %340 : vector<8x1xi1> to vector<8x1xi1>
    %417 = vector.broadcast %416 : vector<8x1xi1> to vector<8x16xi1>
    %418 = arith.select %417, %410, %313 : vector<8x16xi1>, vector<8x16xf32>
    %cst_147 = arith.constant 0.000000e+00 : f32
    %419 = vector.shape_cast %340 : vector<8x1xi1> to vector<8x1xi1>
    %420 = vector.broadcast %419 : vector<8x1xi1> to vector<8x16xi1>
    %421 = vector.broadcast %cst_147 : f32 to vector<8x16xf32>
    %422 = arith.select %420, %412, %421 : vector<8x16xi1>, vector<8x16xf32>
    %c0_148 = arith.constant 0 : index
    %423 = arith.index_cast %c3_i32 : i32 to index
    %c0_149 = arith.constant 0 : index
    %c0_150 = arith.constant 0 : index
    %424 = vector.load %arg7[%c0_148, %423, %c0_149, %c0_150] : memref<2x8x8x16xf32, #tpu.memory_space<vmem>>, vector<1x1x8x16xf32>
    %425 = vector.shape_cast %424 : vector<1x1x8x16xf32> to vector<8x16xf32>
    %426 = vector.shape_cast %381 : vector<8x16xf32> to vector<1x1x8x16xf32>
    tpu.vector_store %arg7[%c0_148, %423, %c0_149, %c0_150], %426 {strides = array<i32>} : memref<2x8x8x16xf32, #tpu.memory_space<vmem>>, vector<1x1x8x16xf32>,
    %c1_151 = arith.constant 1 : index
    %427 = arith.index_cast %326 : i32 to index
    %c0_152 = arith.constant 0 : index
    %c0_153 = arith.constant 0 : index
    %428 = vector.load %arg7[%c1_151, %427, %c0_152, %c0_153] : memref<2x8x8x16xf32, #tpu.memory_space<vmem>>, vector<1x1x8x16xf32>
    %429 = vector.shape_cast %428 : vector<1x1x8x16xf32> to vector<8x16xf32>
    %430 = vector.shape_cast %422 : vector<8x16xf32> to vector<1x1x8x16xf32>
    tpu.vector_store %arg7[%c1_151, %427, %c0_152, %c0_153], %430 {strides = array<i32>} : memref<2x8x8x16xf32, #tpu.memory_space<vmem>>, vector<1x1x8x16xf32>,
    %c4_i32 = arith.constant 4 : i32
    %c7_i32_154 = arith.constant 7 : i32
    %431 = arith.subi %c7_i32_154, %c4_i32 : i32
    %c0_155 = arith.constant 0 : index
    %432 = arith.index_cast %c4_i32 : i32 to index
    %c0_156 = arith.constant 0 : index
    %c0_157 = arith.constant 0 : index
    %433 = vector.load %arg2[%c0_155, %432, %c0_156, %c0_157] : memref<2x8x8x64xf32, #tpu.memory_space<vmem>>, vector<1x1x8x64xf32>
    %434 = vector.shape_cast %433 : vector<1x1x8x64xf32> to vector<8x64xf32>
    %cst_158 = arith.constant dense<0.000000e+00> : vector<8x64xf32>
    %435 = tpu.matmul %374, %1, %cst_158 {dimension_numbers = #tpu.dot_dimension_numbers<[1], [0], [0], [1], [0, 0, 1, 1], [], []>} : vector<8x16xf32>, vector<16x64xf32>, vector<8x64xf32> -> vector<8x64xf32>
    %436 = arith.addf %434, %435 : vector<8x64xf32>
    %c1_159 = arith.constant 1 : index
    %437 = arith.index_cast %431 : i32 to index
    %c0_160 = arith.constant 0 : index
    %c0_161 = arith.constant 0 : index
    %438 = vector.load %arg2[%c1_159, %437, %c0_160, %c0_161] : memref<2x8x8x64xf32, #tpu.memory_space<vmem>>, vector<1x1x8x64xf32>
    %439 = vector.shape_cast %438 : vector<1x1x8x64xf32> to vector<8x64xf32>
    %cst_162 = arith.constant dense<0.000000e+00> : vector<8x64xf32>
    %440 = tpu.matmul %415, %2, %cst_162 {dimension_numbers = #tpu.dot_dimension_numbers<[1], [0], [0], [1], [0, 0, 1, 1], [], []>} : vector<8x16xf32>, vector<16x64xf32>, vector<8x64xf32> -> vector<8x64xf32>
    %441 = arith.addf %439, %440 : vector<8x64xf32>
    %442 = vector.broadcast %c4_i32 : i32 to vector<8x1xi32>
    %443 = arith.cmpi sgt, %0, %442 : vector<8x1xi32>
    %444 = vector.broadcast %431 : i32 to vector<8x1xi32>
    %445 = arith.cmpi sgt, %0, %444 : vector<8x1xi32>
    %446 = vector.extract_strided_slice %436 {offsets = [0, 0], sizes = [8, 16], strides = [1, 1]} : vector<8x64xf32> to vector<8x16xf32>
    %cst_163 = arith.constant 5.000000e-01 : f32
    %447 = vector.broadcast %cst_163 : f32 to vector<8x16xf32>
    %448 = arith.mulf %447, %446 : vector<8x16xf32>
    %449 = math.tanh %448 : vector<8x16xf32>
    %cst_164 = arith.constant 5.000000e-01 : f32
    %450 = vector.broadcast %cst_164 : f32 to vector<8x16xf32>
    %451 = arith.mulf %450, %449 : vector<8x16xf32>
    %cst_165 = arith.constant 5.000000e-01 : f32
    %452 = vector.broadcast %cst_165 : f32 to vector<8x16xf32>
    %453 = arith.addf %451, %452 : vector<8x16xf32>
    %454 = vector.extract_strided_slice %436 {offsets = [0, 16], sizes = [8, 16], strides = [1, 1]} : vector<8x64xf32> to vector<8x16xf32>
    %cst_166 = arith.constant 5.000000e-01 : f32
    %455 = vector.broadcast %cst_166 : f32 to vector<8x16xf32>
    %456 = arith.mulf %455, %454 : vector<8x16xf32>
    %457 = math.tanh %456 : vector<8x16xf32>
    %cst_167 = arith.constant 5.000000e-01 : f32
    %458 = vector.broadcast %cst_167 : f32 to vector<8x16xf32>
    %459 = arith.mulf %458, %457 : vector<8x16xf32>
    %cst_168 = arith.constant 5.000000e-01 : f32
    %460 = vector.broadcast %cst_168 : f32 to vector<8x16xf32>
    %461 = arith.addf %459, %460 : vector<8x16xf32>
    %462 = vector.extract_strided_slice %436 {offsets = [0, 32], sizes = [8, 16], strides = [1, 1]} : vector<8x64xf32> to vector<8x16xf32>
    %463 = math.tanh %462 : vector<8x16xf32>
    %464 = vector.extract_strided_slice %436 {offsets = [0, 48], sizes = [8, 16], strides = [1, 1]} : vector<8x64xf32> to vector<8x16xf32>
    %cst_169 = arith.constant 5.000000e-01 : f32
    %465 = vector.broadcast %cst_169 : f32 to vector<8x16xf32>
    %466 = arith.mulf %465, %464 : vector<8x16xf32>
    %467 = math.tanh %466 : vector<8x16xf32>
    %cst_170 = arith.constant 5.000000e-01 : f32
    %468 = vector.broadcast %cst_170 : f32 to vector<8x16xf32>
    %469 = arith.mulf %468, %467 : vector<8x16xf32>
    %cst_171 = arith.constant 5.000000e-01 : f32
    %470 = vector.broadcast %cst_171 : f32 to vector<8x16xf32>
    %471 = arith.addf %469, %470 : vector<8x16xf32>
    %472 = arith.mulf %461, %377 : vector<8x16xf32>
    %473 = arith.mulf %453, %463 : vector<8x16xf32>
    %474 = arith.addf %472, %473 : vector<8x16xf32>
    %475 = math.tanh %474 : vector<8x16xf32>
    %476 = arith.mulf %471, %475 : vector<8x16xf32>
    %477 = vector.shape_cast %443 : vector<8x1xi1> to vector<8x1xi1>
    %478 = vector.broadcast %477 : vector<8x1xi1> to vector<8x16xi1>
    %479 = arith.select %478, %476, %374 : vector<8x16xi1>, vector<8x16xf32>
    %480 = vector.shape_cast %443 : vector<8x1xi1> to vector<8x1xi1>
    %481 = vector.broadcast %480 : vector<8x1xi1> to vector<8x16xi1>
    %482 = arith.select %481, %474, %377 : vector<8x16xi1>, vector<8x16xf32>
    %cst_172 = arith.constant 0.000000e+00 : f32
    %483 = vector.shape_cast %443 : vector<8x1xi1> to vector<8x1xi1>
    %484 = vector.broadcast %483 : vector<8x1xi1> to vector<8x16xi1>
    %485 = vector.broadcast %cst_172 : f32 to vector<8x16xf32>
    %486 = arith.select %484, %476, %485 : vector<8x16xi1>, vector<8x16xf32>
    %487 = vector.extract_strided_slice %441 {offsets = [0, 0], sizes = [8, 16], strides = [1, 1]} : vector<8x64xf32> to vector<8x16xf32>
    %cst_173 = arith.constant 5.000000e-01 : f32
    %488 = vector.broadcast %cst_173 : f32 to vector<8x16xf32>
    %489 = arith.mulf %488, %487 : vector<8x16xf32>
    %490 = math.tanh %489 : vector<8x16xf32>
    %cst_174 = arith.constant 5.000000e-01 : f32
    %491 = vector.broadcast %cst_174 : f32 to vector<8x16xf32>
    %492 = arith.mulf %491, %490 : vector<8x16xf32>
    %cst_175 = arith.constant 5.000000e-01 : f32
    %493 = vector.broadcast %cst_175 : f32 to vector<8x16xf32>
    %494 = arith.addf %492, %493 : vector<8x16xf32>
    %495 = vector.extract_strided_slice %441 {offsets = [0, 16], sizes = [8, 16], strides = [1, 1]} : vector<8x64xf32> to vector<8x16xf32>
    %cst_176 = arith.constant 5.000000e-01 : f32
    %496 = vector.broadcast %cst_176 : f32 to vector<8x16xf32>
    %497 = arith.mulf %496, %495 : vector<8x16xf32>
    %498 = math.tanh %497 : vector<8x16xf32>
    %cst_177 = arith.constant 5.000000e-01 : f32
    %499 = vector.broadcast %cst_177 : f32 to vector<8x16xf32>
    %500 = arith.mulf %499, %498 : vector<8x16xf32>
    %cst_178 = arith.constant 5.000000e-01 : f32
    %501 = vector.broadcast %cst_178 : f32 to vector<8x16xf32>
    %502 = arith.addf %500, %501 : vector<8x16xf32>
    %503 = vector.extract_strided_slice %441 {offsets = [0, 32], sizes = [8, 16], strides = [1, 1]} : vector<8x64xf32> to vector<8x16xf32>
    %504 = math.tanh %503 : vector<8x16xf32>
    %505 = vector.extract_strided_slice %441 {offsets = [0, 48], sizes = [8, 16], strides = [1, 1]} : vector<8x64xf32> to vector<8x16xf32>
    %cst_179 = arith.constant 5.000000e-01 : f32
    %506 = vector.broadcast %cst_179 : f32 to vector<8x16xf32>
    %507 = arith.mulf %506, %505 : vector<8x16xf32>
    %508 = math.tanh %507 : vector<8x16xf32>
    %cst_180 = arith.constant 5.000000e-01 : f32
    %509 = vector.broadcast %cst_180 : f32 to vector<8x16xf32>
    %510 = arith.mulf %509, %508 : vector<8x16xf32>
    %cst_181 = arith.constant 5.000000e-01 : f32
    %511 = vector.broadcast %cst_181 : f32 to vector<8x16xf32>
    %512 = arith.addf %510, %511 : vector<8x16xf32>
    %513 = arith.mulf %502, %418 : vector<8x16xf32>
    %514 = arith.mulf %494, %504 : vector<8x16xf32>
    %515 = arith.addf %513, %514 : vector<8x16xf32>
    %516 = math.tanh %515 : vector<8x16xf32>
    %517 = arith.mulf %512, %516 : vector<8x16xf32>
    %518 = vector.shape_cast %445 : vector<8x1xi1> to vector<8x1xi1>
    %519 = vector.broadcast %518 : vector<8x1xi1> to vector<8x16xi1>
    %520 = arith.select %519, %517, %415 : vector<8x16xi1>, vector<8x16xf32>
    %521 = vector.shape_cast %445 : vector<8x1xi1> to vector<8x1xi1>
    %522 = vector.broadcast %521 : vector<8x1xi1> to vector<8x16xi1>
    %523 = arith.select %522, %515, %418 : vector<8x16xi1>, vector<8x16xf32>
    %cst_182 = arith.constant 0.000000e+00 : f32
    %524 = vector.shape_cast %445 : vector<8x1xi1> to vector<8x1xi1>
    %525 = vector.broadcast %524 : vector<8x1xi1> to vector<8x16xi1>
    %526 = vector.broadcast %cst_182 : f32 to vector<8x16xf32>
    %527 = arith.select %525, %517, %526 : vector<8x16xi1>, vector<8x16xf32>
    %c0_183 = arith.constant 0 : index
    %528 = arith.index_cast %c4_i32 : i32 to index
    %c0_184 = arith.constant 0 : index
    %c0_185 = arith.constant 0 : index
    %529 = vector.load %arg7[%c0_183, %528, %c0_184, %c0_185] : memref<2x8x8x16xf32, #tpu.memory_space<vmem>>, vector<1x1x8x16xf32>
    %530 = vector.shape_cast %529 : vector<1x1x8x16xf32> to vector<8x16xf32>
    %531 = vector.shape_cast %486 : vector<8x16xf32> to vector<1x1x8x16xf32>
    tpu.vector_store %arg7[%c0_183, %528, %c0_184, %c0_185], %531 {strides = array<i32>} : memref<2x8x8x16xf32, #tpu.memory_space<vmem>>, vector<1x1x8x16xf32>,
    %c1_186 = arith.constant 1 : index
    %532 = arith.index_cast %431 : i32 to index
    %c0_187 = arith.constant 0 : index
    %c0_188 = arith.constant 0 : index
    %533 = vector.load %arg7[%c1_186, %532, %c0_187, %c0_188] : memref<2x8x8x16xf32, #tpu.memory_space<vmem>>, vector<1x1x8x16xf32>
    %534 = vector.shape_cast %533 : vector<1x1x8x16xf32> to vector<8x16xf32>
    %535 = vector.shape_cast %527 : vector<8x16xf32> to vector<1x1x8x16xf32>
    tpu.vector_store %arg7[%c1_186, %532, %c0_187, %c0_188], %535 {strides = array<i32>} : memref<2x8x8x16xf32, #tpu.memory_space<vmem>>, vector<1x1x8x16xf32>,
    %c5_i32 = arith.constant 5 : i32
    %c7_i32_189 = arith.constant 7 : i32
    %536 = arith.subi %c7_i32_189, %c5_i32 : i32
    %c0_190 = arith.constant 0 : index
    %537 = arith.index_cast %c5_i32 : i32 to index
    %c0_191 = arith.constant 0 : index
    %c0_192 = arith.constant 0 : index
    %538 = vector.load %arg2[%c0_190, %537, %c0_191, %c0_192] : memref<2x8x8x64xf32, #tpu.memory_space<vmem>>, vector<1x1x8x64xf32>
    %539 = vector.shape_cast %538 : vector<1x1x8x64xf32> to vector<8x64xf32>
    %cst_193 = arith.constant dense<0.000000e+00> : vector<8x64xf32>
    %540 = tpu.matmul %479, %1, %cst_193 {dimension_numbers = #tpu.dot_dimension_numbers<[1], [0], [0], [1], [0, 0, 1, 1], [], []>} : vector<8x16xf32>, vector<16x64xf32>, vector<8x64xf32> -> vector<8x64xf32>
    %541 = arith.addf %539, %540 : vector<8x64xf32>
    %c1_194 = arith.constant 1 : index
    %542 = arith.index_cast %536 : i32 to index
    %c0_195 = arith.constant 0 : index
    %c0_196 = arith.constant 0 : index
    %543 = vector.load %arg2[%c1_194, %542, %c0_195, %c0_196] : memref<2x8x8x64xf32, #tpu.memory_space<vmem>>, vector<1x1x8x64xf32>
    %544 = vector.shape_cast %543 : vector<1x1x8x64xf32> to vector<8x64xf32>
    %cst_197 = arith.constant dense<0.000000e+00> : vector<8x64xf32>
    %545 = tpu.matmul %520, %2, %cst_197 {dimension_numbers = #tpu.dot_dimension_numbers<[1], [0], [0], [1], [0, 0, 1, 1], [], []>} : vector<8x16xf32>, vector<16x64xf32>, vector<8x64xf32> -> vector<8x64xf32>
    %546 = arith.addf %544, %545 : vector<8x64xf32>
    %547 = vector.broadcast %c5_i32 : i32 to vector<8x1xi32>
    %548 = arith.cmpi sgt, %0, %547 : vector<8x1xi32>
    %549 = vector.broadcast %536 : i32 to vector<8x1xi32>
    %550 = arith.cmpi sgt, %0, %549 : vector<8x1xi32>
    %551 = vector.extract_strided_slice %541 {offsets = [0, 0], sizes = [8, 16], strides = [1, 1]} : vector<8x64xf32> to vector<8x16xf32>
    %cst_198 = arith.constant 5.000000e-01 : f32
    %552 = vector.broadcast %cst_198 : f32 to vector<8x16xf32>
    %553 = arith.mulf %552, %551 : vector<8x16xf32>
    %554 = math.tanh %553 : vector<8x16xf32>
    %cst_199 = arith.constant 5.000000e-01 : f32
    %555 = vector.broadcast %cst_199 : f32 to vector<8x16xf32>
    %556 = arith.mulf %555, %554 : vector<8x16xf32>
    %cst_200 = arith.constant 5.000000e-01 : f32
    %557 = vector.broadcast %cst_200 : f32 to vector<8x16xf32>
    %558 = arith.addf %556, %557 : vector<8x16xf32>
    %559 = vector.extract_strided_slice %541 {offsets = [0, 16], sizes = [8, 16], strides = [1, 1]} : vector<8x64xf32> to vector<8x16xf32>
    %cst_201 = arith.constant 5.000000e-01 : f32
    %560 = vector.broadcast %cst_201 : f32 to vector<8x16xf32>
    %561 = arith.mulf %560, %559 : vector<8x16xf32>
    %562 = math.tanh %561 : vector<8x16xf32>
    %cst_202 = arith.constant 5.000000e-01 : f32
    %563 = vector.broadcast %cst_202 : f32 to vector<8x16xf32>
    %564 = arith.mulf %563, %562 : vector<8x16xf32>
    %cst_203 = arith.constant 5.000000e-01 : f32
    %565 = vector.broadcast %cst_203 : f32 to vector<8x16xf32>
    %566 = arith.addf %564, %565 : vector<8x16xf32>
    %567 = vector.extract_strided_slice %541 {offsets = [0, 32], sizes = [8, 16], strides = [1, 1]} : vector<8x64xf32> to vector<8x16xf32>
    %568 = math.tanh %567 : vector<8x16xf32>
    %569 = vector.extract_strided_slice %541 {offsets = [0, 48], sizes = [8, 16], strides = [1, 1]} : vector<8x64xf32> to vector<8x16xf32>
    %cst_204 = arith.constant 5.000000e-01 : f32
    %570 = vector.broadcast %cst_204 : f32 to vector<8x16xf32>
    %571 = arith.mulf %570, %569 : vector<8x16xf32>
    %572 = math.tanh %571 : vector<8x16xf32>
    %cst_205 = arith.constant 5.000000e-01 : f32
    %573 = vector.broadcast %cst_205 : f32 to vector<8x16xf32>
    %574 = arith.mulf %573, %572 : vector<8x16xf32>
    %cst_206 = arith.constant 5.000000e-01 : f32
    %575 = vector.broadcast %cst_206 : f32 to vector<8x16xf32>
    %576 = arith.addf %574, %575 : vector<8x16xf32>
    %577 = arith.mulf %566, %482 : vector<8x16xf32>
    %578 = arith.mulf %558, %568 : vector<8x16xf32>
    %579 = arith.addf %577, %578 : vector<8x16xf32>
    %580 = math.tanh %579 : vector<8x16xf32>
    %581 = arith.mulf %576, %580 : vector<8x16xf32>
    %582 = vector.shape_cast %548 : vector<8x1xi1> to vector<8x1xi1>
    %583 = vector.broadcast %582 : vector<8x1xi1> to vector<8x16xi1>
    %584 = arith.select %583, %581, %479 : vector<8x16xi1>, vector<8x16xf32>
    %585 = vector.shape_cast %548 : vector<8x1xi1> to vector<8x1xi1>
    %586 = vector.broadcast %585 : vector<8x1xi1> to vector<8x16xi1>
    %587 = arith.select %586, %579, %482 : vector<8x16xi1>, vector<8x16xf32>
    %cst_207 = arith.constant 0.000000e+00 : f32
    %588 = vector.shape_cast %548 : vector<8x1xi1> to vector<8x1xi1>
    %589 = vector.broadcast %588 : vector<8x1xi1> to vector<8x16xi1>
    %590 = vector.broadcast %cst_207 : f32 to vector<8x16xf32>
    %591 = arith.select %589, %581, %590 : vector<8x16xi1>, vector<8x16xf32>
    %592 = vector.extract_strided_slice %546 {offsets = [0, 0], sizes = [8, 16], strides = [1, 1]} : vector<8x64xf32> to vector<8x16xf32>
    %cst_208 = arith.constant 5.000000e-01 : f32
    %593 = vector.broadcast %cst_208 : f32 to vector<8x16xf32>
    %594 = arith.mulf %593, %592 : vector<8x16xf32>
    %595 = math.tanh %594 : vector<8x16xf32>
    %cst_209 = arith.constant 5.000000e-01 : f32
    %596 = vector.broadcast %cst_209 : f32 to vector<8x16xf32>
    %597 = arith.mulf %596, %595 : vector<8x16xf32>
    %cst_210 = arith.constant 5.000000e-01 : f32
    %598 = vector.broadcast %cst_210 : f32 to vector<8x16xf32>
    %599 = arith.addf %597, %598 : vector<8x16xf32>
    %600 = vector.extract_strided_slice %546 {offsets = [0, 16], sizes = [8, 16], strides = [1, 1]} : vector<8x64xf32> to vector<8x16xf32>
    %cst_211 = arith.constant 5.000000e-01 : f32
    %601 = vector.broadcast %cst_211 : f32 to vector<8x16xf32>
    %602 = arith.mulf %601, %600 : vector<8x16xf32>
    %603 = math.tanh %602 : vector<8x16xf32>
    %cst_212 = arith.constant 5.000000e-01 : f32
    %604 = vector.broadcast %cst_212 : f32 to vector<8x16xf32>
    %605 = arith.mulf %604, %603 : vector<8x16xf32>
    %cst_213 = arith.constant 5.000000e-01 : f32
    %606 = vector.broadcast %cst_213 : f32 to vector<8x16xf32>
    %607 = arith.addf %605, %606 : vector<8x16xf32>
    %608 = vector.extract_strided_slice %546 {offsets = [0, 32], sizes = [8, 16], strides = [1, 1]} : vector<8x64xf32> to vector<8x16xf32>
    %609 = math.tanh %608 : vector<8x16xf32>
    %610 = vector.extract_strided_slice %546 {offsets = [0, 48], sizes = [8, 16], strides = [1, 1]} : vector<8x64xf32> to vector<8x16xf32>
    %cst_214 = arith.constant 5.000000e-01 : f32
    %611 = vector.broadcast %cst_214 : f32 to vector<8x16xf32>
    %612 = arith.mulf %611, %610 : vector<8x16xf32>
    %613 = math.tanh %612 : vector<8x16xf32>
    %cst_215 = arith.constant 5.000000e-01 : f32
    %614 = vector.broadcast %cst_215 : f32 to vector<8x16xf32>
    %615 = arith.mulf %614, %613 : vector<8x16xf32>
    %cst_216 = arith.constant 5.000000e-01 : f32
    %616 = vector.broadcast %cst_216 : f32 to vector<8x16xf32>
    %617 = arith.addf %615, %616 : vector<8x16xf32>
    %618 = arith.mulf %607, %523 : vector<8x16xf32>
    %619 = arith.mulf %599, %609 : vector<8x16xf32>
    %620 = arith.addf %618, %619 : vector<8x16xf32>
    %621 = math.tanh %620 : vector<8x16xf32>
    %622 = arith.mulf %617, %621 : vector<8x16xf32>
    %623 = vector.shape_cast %550 : vector<8x1xi1> to vector<8x1xi1>
    %624 = vector.broadcast %623 : vector<8x1xi1> to vector<8x16xi1>
    %625 = arith.select %624, %622, %520 : vector<8x16xi1>, vector<8x16xf32>
    %626 = vector.shape_cast %550 : vector<8x1xi1> to vector<8x1xi1>
    %627 = vector.broadcast %626 : vector<8x1xi1> to vector<8x16xi1>
    %628 = arith.select %627, %620, %523 : vector<8x16xi1>, vector<8x16xf32>
    %cst_217 = arith.constant 0.000000e+00 : f32
    %629 = vector.shape_cast %550 : vector<8x1xi1> to vector<8x1xi1>
    %630 = vector.broadcast %629 : vector<8x1xi1> to vector<8x16xi1>
    %631 = vector.broadcast %cst_217 : f32 to vector<8x16xf32>
    %632 = arith.select %630, %622, %631 : vector<8x16xi1>, vector<8x16xf32>
    %c0_218 = arith.constant 0 : index
    %633 = arith.index_cast %c5_i32 : i32 to index
    %c0_219 = arith.constant 0 : index
    %c0_220 = arith.constant 0 : index
    %634 = vector.load %arg7[%c0_218, %633, %c0_219, %c0_220] : memref<2x8x8x16xf32, #tpu.memory_space<vmem>>, vector<1x1x8x16xf32>
    %635 = vector.shape_cast %634 : vector<1x1x8x16xf32> to vector<8x16xf32>
    %636 = vector.shape_cast %591 : vector<8x16xf32> to vector<1x1x8x16xf32>
    tpu.vector_store %arg7[%c0_218, %633, %c0_219, %c0_220], %636 {strides = array<i32>} : memref<2x8x8x16xf32, #tpu.memory_space<vmem>>, vector<1x1x8x16xf32>,
    %c1_221 = arith.constant 1 : index
    %637 = arith.index_cast %536 : i32 to index
    %c0_222 = arith.constant 0 : index
    %c0_223 = arith.constant 0 : index
    %638 = vector.load %arg7[%c1_221, %637, %c0_222, %c0_223] : memref<2x8x8x16xf32, #tpu.memory_space<vmem>>, vector<1x1x8x16xf32>
    %639 = vector.shape_cast %638 : vector<1x1x8x16xf32> to vector<8x16xf32>
    %640 = vector.shape_cast %632 : vector<8x16xf32> to vector<1x1x8x16xf32>
    tpu.vector_store %arg7[%c1_221, %637, %c0_222, %c0_223], %640 {strides = array<i32>} : memref<2x8x8x16xf32, #tpu.memory_space<vmem>>, vector<1x1x8x16xf32>,
    %c6_i32 = arith.constant 6 : i32
    %c7_i32_224 = arith.constant 7 : i32
    %641 = arith.subi %c7_i32_224, %c6_i32 : i32
    %c0_225 = arith.constant 0 : index
    %642 = arith.index_cast %c6_i32 : i32 to index
    %c0_226 = arith.constant 0 : index
    %c0_227 = arith.constant 0 : index
    %643 = vector.load %arg2[%c0_225, %642, %c0_226, %c0_227] : memref<2x8x8x64xf32, #tpu.memory_space<vmem>>, vector<1x1x8x64xf32>
    %644 = vector.shape_cast %643 : vector<1x1x8x64xf32> to vector<8x64xf32>
    %cst_228 = arith.constant dense<0.000000e+00> : vector<8x64xf32>
    %645 = tpu.matmul %584, %1, %cst_228 {dimension_numbers = #tpu.dot_dimension_numbers<[1], [0], [0], [1], [0, 0, 1, 1], [], []>} : vector<8x16xf32>, vector<16x64xf32>, vector<8x64xf32> -> vector<8x64xf32>
    %646 = arith.addf %644, %645 : vector<8x64xf32>
    %c1_229 = arith.constant 1 : index
    %647 = arith.index_cast %641 : i32 to index
    %c0_230 = arith.constant 0 : index
    %c0_231 = arith.constant 0 : index
    %648 = vector.load %arg2[%c1_229, %647, %c0_230, %c0_231] : memref<2x8x8x64xf32, #tpu.memory_space<vmem>>, vector<1x1x8x64xf32>
    %649 = vector.shape_cast %648 : vector<1x1x8x64xf32> to vector<8x64xf32>
    %cst_232 = arith.constant dense<0.000000e+00> : vector<8x64xf32>
    %650 = tpu.matmul %625, %2, %cst_232 {dimension_numbers = #tpu.dot_dimension_numbers<[1], [0], [0], [1], [0, 0, 1, 1], [], []>} : vector<8x16xf32>, vector<16x64xf32>, vector<8x64xf32> -> vector<8x64xf32>
    %651 = arith.addf %649, %650 : vector<8x64xf32>
    %652 = vector.broadcast %c6_i32 : i32 to vector<8x1xi32>
    %653 = arith.cmpi sgt, %0, %652 : vector<8x1xi32>
    %654 = vector.broadcast %641 : i32 to vector<8x1xi32>
    %655 = arith.cmpi sgt, %0, %654 : vector<8x1xi32>
    %656 = vector.extract_strided_slice %646 {offsets = [0, 0], sizes = [8, 16], strides = [1, 1]} : vector<8x64xf32> to vector<8x16xf32>
    %cst_233 = arith.constant 5.000000e-01 : f32
    %657 = vector.broadcast %cst_233 : f32 to vector<8x16xf32>
    %658 = arith.mulf %657, %656 : vector<8x16xf32>
    %659 = math.tanh %658 : vector<8x16xf32>
    %cst_234 = arith.constant 5.000000e-01 : f32
    %660 = vector.broadcast %cst_234 : f32 to vector<8x16xf32>
    %661 = arith.mulf %660, %659 : vector<8x16xf32>
    %cst_235 = arith.constant 5.000000e-01 : f32
    %662 = vector.broadcast %cst_235 : f32 to vector<8x16xf32>
    %663 = arith.addf %661, %662 : vector<8x16xf32>
    %664 = vector.extract_strided_slice %646 {offsets = [0, 16], sizes = [8, 16], strides = [1, 1]} : vector<8x64xf32> to vector<8x16xf32>
    %cst_236 = arith.constant 5.000000e-01 : f32
    %665 = vector.broadcast %cst_236 : f32 to vector<8x16xf32>
    %666 = arith.mulf %665, %664 : vector<8x16xf32>
    %667 = math.tanh %666 : vector<8x16xf32>
    %cst_237 = arith.constant 5.000000e-01 : f32
    %668 = vector.broadcast %cst_237 : f32 to vector<8x16xf32>
    %669 = arith.mulf %668, %667 : vector<8x16xf32>
    %cst_238 = arith.constant 5.000000e-01 : f32
    %670 = vector.broadcast %cst_238 : f32 to vector<8x16xf32>
    %671 = arith.addf %669, %670 : vector<8x16xf32>
    %672 = vector.extract_strided_slice %646 {offsets = [0, 32], sizes = [8, 16], strides = [1, 1]} : vector<8x64xf32> to vector<8x16xf32>
    %673 = math.tanh %672 : vector<8x16xf32>
    %674 = vector.extract_strided_slice %646 {offsets = [0, 48], sizes = [8, 16], strides = [1, 1]} : vector<8x64xf32> to vector<8x16xf32>
    %cst_239 = arith.constant 5.000000e-01 : f32
    %675 = vector.broadcast %cst_239 : f32 to vector<8x16xf32>
    %676 = arith.mulf %675, %674 : vector<8x16xf32>
    %677 = math.tanh %676 : vector<8x16xf32>
    %cst_240 = arith.constant 5.000000e-01 : f32
    %678 = vector.broadcast %cst_240 : f32 to vector<8x16xf32>
    %679 = arith.mulf %678, %677 : vector<8x16xf32>
    %cst_241 = arith.constant 5.000000e-01 : f32
    %680 = vector.broadcast %cst_241 : f32 to vector<8x16xf32>
    %681 = arith.addf %679, %680 : vector<8x16xf32>
    %682 = arith.mulf %671, %587 : vector<8x16xf32>
    %683 = arith.mulf %663, %673 : vector<8x16xf32>
    %684 = arith.addf %682, %683 : vector<8x16xf32>
    %685 = math.tanh %684 : vector<8x16xf32>
    %686 = arith.mulf %681, %685 : vector<8x16xf32>
    %687 = vector.shape_cast %653 : vector<8x1xi1> to vector<8x1xi1>
    %688 = vector.broadcast %687 : vector<8x1xi1> to vector<8x16xi1>
    %689 = arith.select %688, %686, %584 : vector<8x16xi1>, vector<8x16xf32>
    %690 = vector.shape_cast %653 : vector<8x1xi1> to vector<8x1xi1>
    %691 = vector.broadcast %690 : vector<8x1xi1> to vector<8x16xi1>
    %692 = arith.select %691, %684, %587 : vector<8x16xi1>, vector<8x16xf32>
    %cst_242 = arith.constant 0.000000e+00 : f32
    %693 = vector.shape_cast %653 : vector<8x1xi1> to vector<8x1xi1>
    %694 = vector.broadcast %693 : vector<8x1xi1> to vector<8x16xi1>
    %695 = vector.broadcast %cst_242 : f32 to vector<8x16xf32>
    %696 = arith.select %694, %686, %695 : vector<8x16xi1>, vector<8x16xf32>
    %697 = vector.extract_strided_slice %651 {offsets = [0, 0], sizes = [8, 16], strides = [1, 1]} : vector<8x64xf32> to vector<8x16xf32>
    %cst_243 = arith.constant 5.000000e-01 : f32
    %698 = vector.broadcast %cst_243 : f32 to vector<8x16xf32>
    %699 = arith.mulf %698, %697 : vector<8x16xf32>
    %700 = math.tanh %699 : vector<8x16xf32>
    %cst_244 = arith.constant 5.000000e-01 : f32
    %701 = vector.broadcast %cst_244 : f32 to vector<8x16xf32>
    %702 = arith.mulf %701, %700 : vector<8x16xf32>
    %cst_245 = arith.constant 5.000000e-01 : f32
    %703 = vector.broadcast %cst_245 : f32 to vector<8x16xf32>
    %704 = arith.addf %702, %703 : vector<8x16xf32>
    %705 = vector.extract_strided_slice %651 {offsets = [0, 16], sizes = [8, 16], strides = [1, 1]} : vector<8x64xf32> to vector<8x16xf32>
    %cst_246 = arith.constant 5.000000e-01 : f32
    %706 = vector.broadcast %cst_246 : f32 to vector<8x16xf32>
    %707 = arith.mulf %706, %705 : vector<8x16xf32>
    %708 = math.tanh %707 : vector<8x16xf32>
    %cst_247 = arith.constant 5.000000e-01 : f32
    %709 = vector.broadcast %cst_247 : f32 to vector<8x16xf32>
    %710 = arith.mulf %709, %708 : vector<8x16xf32>
    %cst_248 = arith.constant 5.000000e-01 : f32
    %711 = vector.broadcast %cst_248 : f32 to vector<8x16xf32>
    %712 = arith.addf %710, %711 : vector<8x16xf32>
    %713 = vector.extract_strided_slice %651 {offsets = [0, 32], sizes = [8, 16], strides = [1, 1]} : vector<8x64xf32> to vector<8x16xf32>
    %714 = math.tanh %713 : vector<8x16xf32>
    %715 = vector.extract_strided_slice %651 {offsets = [0, 48], sizes = [8, 16], strides = [1, 1]} : vector<8x64xf32> to vector<8x16xf32>
    %cst_249 = arith.constant 5.000000e-01 : f32
    %716 = vector.broadcast %cst_249 : f32 to vector<8x16xf32>
    %717 = arith.mulf %716, %715 : vector<8x16xf32>
    %718 = math.tanh %717 : vector<8x16xf32>
    %cst_250 = arith.constant 5.000000e-01 : f32
    %719 = vector.broadcast %cst_250 : f32 to vector<8x16xf32>
    %720 = arith.mulf %719, %718 : vector<8x16xf32>
    %cst_251 = arith.constant 5.000000e-01 : f32
    %721 = vector.broadcast %cst_251 : f32 to vector<8x16xf32>
    %722 = arith.addf %720, %721 : vector<8x16xf32>
    %723 = arith.mulf %712, %628 : vector<8x16xf32>
    %724 = arith.mulf %704, %714 : vector<8x16xf32>
    %725 = arith.addf %723, %724 : vector<8x16xf32>
    %726 = math.tanh %725 : vector<8x16xf32>
    %727 = arith.mulf %722, %726 : vector<8x16xf32>
    %728 = vector.shape_cast %655 : vector<8x1xi1> to vector<8x1xi1>
    %729 = vector.broadcast %728 : vector<8x1xi1> to vector<8x16xi1>
    %730 = arith.select %729, %727, %625 : vector<8x16xi1>, vector<8x16xf32>
    %731 = vector.shape_cast %655 : vector<8x1xi1> to vector<8x1xi1>
    %732 = vector.broadcast %731 : vector<8x1xi1> to vector<8x16xi1>
    %733 = arith.select %732, %725, %628 : vector<8x16xi1>, vector<8x16xf32>
    %cst_252 = arith.constant 0.000000e+00 : f32
    %734 = vector.shape_cast %655 : vector<8x1xi1> to vector<8x1xi1>
    %735 = vector.broadcast %734 : vector<8x1xi1> to vector<8x16xi1>
    %736 = vector.broadcast %cst_252 : f32 to vector<8x16xf32>
    %737 = arith.select %735, %727, %736 : vector<8x16xi1>, vector<8x16xf32>
    %c0_253 = arith.constant 0 : index
    %738 = arith.index_cast %c6_i32 : i32 to index
    %c0_254 = arith.constant 0 : index
    %c0_255 = arith.constant 0 : index
    %739 = vector.load %arg7[%c0_253, %738, %c0_254, %c0_255] : memref<2x8x8x16xf32, #tpu.memory_space<vmem>>, vector<1x1x8x16xf32>
    %740 = vector.shape_cast %739 : vector<1x1x8x16xf32> to vector<8x16xf32>
    %741 = vector.shape_cast %696 : vector<8x16xf32> to vector<1x1x8x16xf32>
    tpu.vector_store %arg7[%c0_253, %738, %c0_254, %c0_255], %741 {strides = array<i32>} : memref<2x8x8x16xf32, #tpu.memory_space<vmem>>, vector<1x1x8x16xf32>,
    %c1_256 = arith.constant 1 : index
    %742 = arith.index_cast %641 : i32 to index
    %c0_257 = arith.constant 0 : index
    %c0_258 = arith.constant 0 : index
    %743 = vector.load %arg7[%c1_256, %742, %c0_257, %c0_258] : memref<2x8x8x16xf32, #tpu.memory_space<vmem>>, vector<1x1x8x16xf32>
    %744 = vector.shape_cast %743 : vector<1x1x8x16xf32> to vector<8x16xf32>
    %745 = vector.shape_cast %737 : vector<8x16xf32> to vector<1x1x8x16xf32>
    tpu.vector_store %arg7[%c1_256, %742, %c0_257, %c0_258], %745 {strides = array<i32>} : memref<2x8x8x16xf32, #tpu.memory_space<vmem>>, vector<1x1x8x16xf32>,
    %c7_i32_259 = arith.constant 7 : i32
    %c7_i32_260 = arith.constant 7 : i32
    %746 = arith.subi %c7_i32_260, %c7_i32_259 : i32
    %c0_261 = arith.constant 0 : index
    %747 = arith.index_cast %c7_i32_259 : i32 to index
    %c0_262 = arith.constant 0 : index
    %c0_263 = arith.constant 0 : index
    %748 = vector.load %arg2[%c0_261, %747, %c0_262, %c0_263] : memref<2x8x8x64xf32, #tpu.memory_space<vmem>>, vector<1x1x8x64xf32>
    %749 = vector.shape_cast %748 : vector<1x1x8x64xf32> to vector<8x64xf32>
    %cst_264 = arith.constant dense<0.000000e+00> : vector<8x64xf32>
    %750 = tpu.matmul %689, %1, %cst_264 {dimension_numbers = #tpu.dot_dimension_numbers<[1], [0], [0], [1], [0, 0, 1, 1], [], []>} : vector<8x16xf32>, vector<16x64xf32>, vector<8x64xf32> -> vector<8x64xf32>
    %751 = arith.addf %749, %750 : vector<8x64xf32>
    %c1_265 = arith.constant 1 : index
    %752 = arith.index_cast %746 : i32 to index
    %c0_266 = arith.constant 0 : index
    %c0_267 = arith.constant 0 : index
    %753 = vector.load %arg2[%c1_265, %752, %c0_266, %c0_267] : memref<2x8x8x64xf32, #tpu.memory_space<vmem>>, vector<1x1x8x64xf32>
    %754 = vector.shape_cast %753 : vector<1x1x8x64xf32> to vector<8x64xf32>
    %cst_268 = arith.constant dense<0.000000e+00> : vector<8x64xf32>
    %755 = tpu.matmul %730, %2, %cst_268 {dimension_numbers = #tpu.dot_dimension_numbers<[1], [0], [0], [1], [0, 0, 1, 1], [], []>} : vector<8x16xf32>, vector<16x64xf32>, vector<8x64xf32> -> vector<8x64xf32>
    %756 = arith.addf %754, %755 : vector<8x64xf32>
    %757 = vector.broadcast %c7_i32_259 : i32 to vector<8x1xi32>
    %758 = arith.cmpi sgt, %0, %757 : vector<8x1xi32>
    %759 = vector.broadcast %746 : i32 to vector<8x1xi32>
    %760 = arith.cmpi sgt, %0, %759 : vector<8x1xi32>
    %761 = vector.extract_strided_slice %751 {offsets = [0, 0], sizes = [8, 16], strides = [1, 1]} : vector<8x64xf32> to vector<8x16xf32>
    %cst_269 = arith.constant 5.000000e-01 : f32
    %762 = vector.broadcast %cst_269 : f32 to vector<8x16xf32>
    %763 = arith.mulf %762, %761 : vector<8x16xf32>
    %764 = math.tanh %763 : vector<8x16xf32>
    %cst_270 = arith.constant 5.000000e-01 : f32
    %765 = vector.broadcast %cst_270 : f32 to vector<8x16xf32>
    %766 = arith.mulf %765, %764 : vector<8x16xf32>
    %cst_271 = arith.constant 5.000000e-01 : f32
    %767 = vector.broadcast %cst_271 : f32 to vector<8x16xf32>
    %768 = arith.addf %766, %767 : vector<8x16xf32>
    %769 = vector.extract_strided_slice %751 {offsets = [0, 16], sizes = [8, 16], strides = [1, 1]} : vector<8x64xf32> to vector<8x16xf32>
    %cst_272 = arith.constant 5.000000e-01 : f32
    %770 = vector.broadcast %cst_272 : f32 to vector<8x16xf32>
    %771 = arith.mulf %770, %769 : vector<8x16xf32>
    %772 = math.tanh %771 : vector<8x16xf32>
    %cst_273 = arith.constant 5.000000e-01 : f32
    %773 = vector.broadcast %cst_273 : f32 to vector<8x16xf32>
    %774 = arith.mulf %773, %772 : vector<8x16xf32>
    %cst_274 = arith.constant 5.000000e-01 : f32
    %775 = vector.broadcast %cst_274 : f32 to vector<8x16xf32>
    %776 = arith.addf %774, %775 : vector<8x16xf32>
    %777 = vector.extract_strided_slice %751 {offsets = [0, 32], sizes = [8, 16], strides = [1, 1]} : vector<8x64xf32> to vector<8x16xf32>
    %778 = math.tanh %777 : vector<8x16xf32>
    %779 = vector.extract_strided_slice %751 {offsets = [0, 48], sizes = [8, 16], strides = [1, 1]} : vector<8x64xf32> to vector<8x16xf32>
    %cst_275 = arith.constant 5.000000e-01 : f32
    %780 = vector.broadcast %cst_275 : f32 to vector<8x16xf32>
    %781 = arith.mulf %780, %779 : vector<8x16xf32>
    %782 = math.tanh %781 : vector<8x16xf32>
    %cst_276 = arith.constant 5.000000e-01 : f32
    %783 = vector.broadcast %cst_276 : f32 to vector<8x16xf32>
    %784 = arith.mulf %783, %782 : vector<8x16xf32>
    %cst_277 = arith.constant 5.000000e-01 : f32
    %785 = vector.broadcast %cst_277 : f32 to vector<8x16xf32>
    %786 = arith.addf %784, %785 : vector<8x16xf32>
    %787 = arith.mulf %776, %692 : vector<8x16xf32>
    %788 = arith.mulf %768, %778 : vector<8x16xf32>
    %789 = arith.addf %787, %788 : vector<8x16xf32>
    %790 = math.tanh %789 : vector<8x16xf32>
    %791 = arith.mulf %786, %790 : vector<8x16xf32>
    %792 = vector.shape_cast %758 : vector<8x1xi1> to vector<8x1xi1>
    %793 = vector.broadcast %792 : vector<8x1xi1> to vector<8x16xi1>
    %794 = arith.select %793, %791, %689 : vector<8x16xi1>, vector<8x16xf32>
    %795 = vector.shape_cast %758 : vector<8x1xi1> to vector<8x1xi1>
    %796 = vector.broadcast %795 : vector<8x1xi1> to vector<8x16xi1>
    %797 = arith.select %796, %789, %692 : vector<8x16xi1>, vector<8x16xf32>
    %cst_278 = arith.constant 0.000000e+00 : f32
    %798 = vector.shape_cast %758 : vector<8x1xi1> to vector<8x1xi1>
    %799 = vector.broadcast %798 : vector<8x1xi1> to vector<8x16xi1>
    %800 = vector.broadcast %cst_278 : f32 to vector<8x16xf32>
    %801 = arith.select %799, %791, %800 : vector<8x16xi1>, vector<8x16xf32>
    %802 = vector.extract_strided_slice %756 {offsets = [0, 0], sizes = [8, 16], strides = [1, 1]} : vector<8x64xf32> to vector<8x16xf32>
    %cst_279 = arith.constant 5.000000e-01 : f32
    %803 = vector.broadcast %cst_279 : f32 to vector<8x16xf32>
    %804 = arith.mulf %803, %802 : vector<8x16xf32>
    %805 = math.tanh %804 : vector<8x16xf32>
    %cst_280 = arith.constant 5.000000e-01 : f32
    %806 = vector.broadcast %cst_280 : f32 to vector<8x16xf32>
    %807 = arith.mulf %806, %805 : vector<8x16xf32>
    %cst_281 = arith.constant 5.000000e-01 : f32
    %808 = vector.broadcast %cst_281 : f32 to vector<8x16xf32>
    %809 = arith.addf %807, %808 : vector<8x16xf32>
    %810 = vector.extract_strided_slice %756 {offsets = [0, 16], sizes = [8, 16], strides = [1, 1]} : vector<8x64xf32> to vector<8x16xf32>
    %cst_282 = arith.constant 5.000000e-01 : f32
    %811 = vector.broadcast %cst_282 : f32 to vector<8x16xf32>
    %812 = arith.mulf %811, %810 : vector<8x16xf32>
    %813 = math.tanh %812 : vector<8x16xf32>
    %cst_283 = arith.constant 5.000000e-01 : f32
    %814 = vector.broadcast %cst_283 : f32 to vector<8x16xf32>
    %815 = arith.mulf %814, %813 : vector<8x16xf32>
    %cst_284 = arith.constant 5.000000e-01 : f32
    %816 = vector.broadcast %cst_284 : f32 to vector<8x16xf32>
    %817 = arith.addf %815, %816 : vector<8x16xf32>
    %818 = vector.extract_strided_slice %756 {offsets = [0, 32], sizes = [8, 16], strides = [1, 1]} : vector<8x64xf32> to vector<8x16xf32>
    %819 = math.tanh %818 : vector<8x16xf32>
    %820 = vector.extract_strided_slice %756 {offsets = [0, 48], sizes = [8, 16], strides = [1, 1]} : vector<8x64xf32> to vector<8x16xf32>
    %cst_285 = arith.constant 5.000000e-01 : f32
    %821 = vector.broadcast %cst_285 : f32 to vector<8x16xf32>
    %822 = arith.mulf %821, %820 : vector<8x16xf32>
    %823 = math.tanh %822 : vector<8x16xf32>
    %cst_286 = arith.constant 5.000000e-01 : f32
    %824 = vector.broadcast %cst_286 : f32 to vector<8x16xf32>
    %825 = arith.mulf %824, %823 : vector<8x16xf32>
    %cst_287 = arith.constant 5.000000e-01 : f32
    %826 = vector.broadcast %cst_287 : f32 to vector<8x16xf32>
    %827 = arith.addf %825, %826 : vector<8x16xf32>
    %828 = arith.mulf %817, %733 : vector<8x16xf32>
    %829 = arith.mulf %809, %819 : vector<8x16xf32>
    %830 = arith.addf %828, %829 : vector<8x16xf32>
    %831 = math.tanh %830 : vector<8x16xf32>
    %832 = arith.mulf %827, %831 : vector<8x16xf32>
    %833 = vector.shape_cast %760 : vector<8x1xi1> to vector<8x1xi1>
    %834 = vector.broadcast %833 : vector<8x1xi1> to vector<8x16xi1>
    %835 = arith.select %834, %832, %730 : vector<8x16xi1>, vector<8x16xf32>
    %836 = vector.shape_cast %760 : vector<8x1xi1> to vector<8x1xi1>
    %837 = vector.broadcast %836 : vector<8x1xi1> to vector<8x16xi1>
    %838 = arith.select %837, %830, %733 : vector<8x16xi1>, vector<8x16xf32>
    %cst_288 = arith.constant 0.000000e+00 : f32
    %839 = vector.shape_cast %760 : vector<8x1xi1> to vector<8x1xi1>
    %840 = vector.broadcast %839 : vector<8x1xi1> to vector<8x16xi1>
    %841 = vector.broadcast %cst_288 : f32 to vector<8x16xf32>
    %842 = arith.select %840, %832, %841 : vector<8x16xi1>, vector<8x16xf32>
    %c0_289 = arith.constant 0 : index
    %843 = arith.index_cast %c7_i32_259 : i32 to index
    %c0_290 = arith.constant 0 : index
    %c0_291 = arith.constant 0 : index
    %844 = vector.load %arg7[%c0_289, %843, %c0_290, %c0_291] : memref<2x8x8x16xf32, #tpu.memory_space<vmem>>, vector<1x1x8x16xf32>
    %845 = vector.shape_cast %844 : vector<1x1x8x16xf32> to vector<8x16xf32>
    %846 = vector.shape_cast %801 : vector<8x16xf32> to vector<1x1x8x16xf32>
    tpu.vector_store %arg7[%c0_289, %843, %c0_290, %c0_291], %846 {strides = array<i32>} : memref<2x8x8x16xf32, #tpu.memory_space<vmem>>, vector<1x1x8x16xf32>,
    %c1_292 = arith.constant 1 : index
    %847 = arith.index_cast %746 : i32 to index
    %c0_293 = arith.constant 0 : index
    %c0_294 = arith.constant 0 : index
    %848 = vector.load %arg7[%c1_292, %847, %c0_293, %c0_294] : memref<2x8x8x16xf32, #tpu.memory_space<vmem>>, vector<1x1x8x16xf32>
    %849 = vector.shape_cast %848 : vector<1x1x8x16xf32> to vector<8x16xf32>
    %850 = vector.shape_cast %842 : vector<8x16xf32> to vector<1x1x8x16xf32>
    tpu.vector_store %arg7[%c1_292, %847, %c0_293, %c0_294], %850 {strides = array<i32>} : memref<2x8x8x16xf32, #tpu.memory_space<vmem>>, vector<1x1x8x16xf32>,
    %c8_i32 = arith.constant 8 : i32
    %c0_295 = arith.constant 0 : index
    %c0_296 = arith.constant 0 : index
    %c0_297 = arith.constant 0 : index
    %851 = vector.load %arg8[%c0_295, %c0_296, %c0_297] : memref<2x8x16xf32, #tpu.memory_space<vmem>>, vector<1x8x16xf32>
    %852 = vector.shape_cast %851 : vector<1x8x16xf32> to vector<8x16xf32>
    %853 = vector.shape_cast %794 : vector<8x16xf32> to vector<1x8x16xf32>
    tpu.vector_store %arg8[%c0_295, %c0_296, %c0_297], %853 {strides = array<i32>} : memref<2x8x16xf32, #tpu.memory_space<vmem>>, vector<1x8x16xf32>,
    %c1_298 = arith.constant 1 : index
    %c0_299 = arith.constant 0 : index
    %c0_300 = arith.constant 0 : index
    %854 = vector.load %arg8[%c1_298, %c0_299, %c0_300] : memref<2x8x16xf32, #tpu.memory_space<vmem>>, vector<1x8x16xf32>
    %855 = vector.shape_cast %854 : vector<1x8x16xf32> to vector<8x16xf32>
    %856 = vector.shape_cast %835 : vector<8x16xf32> to vector<1x8x16xf32>
    tpu.vector_store %arg8[%c1_298, %c0_299, %c0_300], %856 {strides = array<i32>} : memref<2x8x16xf32, #tpu.memory_space<vmem>>, vector<1x8x16xf32>,
    return
  }
  func.func @transform_0(%arg0: i32) -> (i32, i32) {
    %c0_i32 = arith.constant 0 : i32
    %c0_i32_0 = arith.constant 0 : i32
    %c0_i32_1 = arith.constant 0 : i32
    return %c0_i32, %c0_i32_0 : i32, i32
  }
  func.func @transform_1(%arg0: i32) -> (i32, i32, i32, i32) {
    %c0_i32 = arith.constant 0 : i32
    %c0_i32_0 = arith.constant 0 : i32
    %c0_i32_1 = arith.constant 0 : i32
    %c0_i32_2 = arith.constant 0 : i32
    %c0_i32_3 = arith.constant 0 : i32
    return %c0_i32, %c0_i32_0, %c0_i32_1, %c0_i32_2 : i32, i32, i32, i32
  }
  func.func @transform_2(%arg0: i32) -> (i32, i32) {
    %c0_i32 = arith.constant 0 : i32
    %c0_i32_0 = arith.constant 0 : i32
    %c0_i32_1 = arith.constant 0 : i32
    return %c0_i32, %c0_i32_0 : i32, i32
  }
  func.func @transform_3(%arg0: i32) -> (i32, i32) {
    %c0_i32 = arith.constant 0 : i32
    %c0_i32_0 = arith.constant 0 : i32
    %c0_i32_1 = arith.constant 0 : i32
    return %c0_i32, %c0_i32_0 : i32, i32
  }
  func.func @transform_4(%arg0: i32) -> (i32, i32, i32) {
    %c0_i32 = arith.constant 0 : i32
    %c0_i32_0 = arith.constant 0 : i32
    %c0_i32_1 = arith.constant 0 : i32
    %c0_i32_2 = arith.constant 0 : i32
    return %c0_i32, %c0_i32_0, %c0_i32_1 : i32, i32, i32
  }
  func.func @transform_5(%arg0: i32) -> (i32, i32, i32) {
    %c0_i32 = arith.constant 0 : i32
    %c0_i32_0 = arith.constant 0 : i32
    %c0_i32_1 = arith.constant 0 : i32
    %c0_i32_2 = arith.constant 0 : i32
    return %c0_i32, %c0_i32_0, %c0_i32_1 : i32, i32, i32
  }
  func.func @transform_6(%arg0: i32) -> (i32, i32, i32, i32) {
    %c0_i32 = arith.constant 0 : i32
    %c0_i32_0 = arith.constant 0 : i32
    %c0_i32_1 = arith.constant 0 : i32
    %c0_i32_2 = arith.constant 0 : i32
    %c0_i32_3 = arith.constant 0 : i32
    return %c0_i32, %c0_i32_0, %c0_i32_1, %c0_i32_2 : i32, i32, i32, i32
  }
  func.func @transform_7(%arg0: i32) -> (i32, i32, i32) {
    %c0_i32 = arith.constant 0 : i32
    %c0_i32_0 = arith.constant 0 : i32
    %c0_i32_1 = arith.constant 0 : i32
    %c0_i32_2 = arith.constant 0 : i32
    return %c0_i32, %c0_i32_0, %c0_i32_1 : i32, i32, i32
  }
}

</mosaic_0001>

<bundles_post_ra>
// kernel: tpu_custom_call.1
= control target key start
LH: loop header
LB: loop body
LE: loop exit
PB: predicated region body
PF: predicated region fallthrough
CT: control target
= control target key end

     0   :  { %13 = vsyncpa [#allocation3], 0  ;;  %s3093_s0 = inlined_call_operand.vmem [shape: s32[8,1], index: 0, kind: input, shape index: {}]   ;;  %s3094_s1 = inlined_call_operand.hbm [shape: f32[2,8,8,64], index: 1, kind: input, shape index: {}]   ;;  %s3095_s2 = inlined_call_operand.vmem [shape: f32[16,64], index: 2, kind: input, shape index: {}]   ;;  %s3096_s3 = inlined_call_operand.hbm [shape: f32[16,64], index: 3, kind: input, shape index: {}]   ;;  %s3097_s4 = inlined_call_operand.hbm [shape: f32[2,8,16], index: 4, kind: input, shape index: {}]   ;;  %s3098_s5 = inlined_call_operand.hbm [shape: f32[2,8,16], index: 5, kind: input, shape index: {}]   ;;  %s3099_s6 = inlined_call_operand.hbm [shape: f32[2,8,8,16], index: 6, kind: output, shape index: {0}]   ;;  %s3100_s7 = inlined_call_operand.hbm [shape: f32[2,8,16], index: 7, kind: output, shape index: {1}]  }
   0x1   :  { %14 = vsyncpa [#allocation6], 0 }
   0x2   :  { %15 = vsyncpa [#allocation9], 0 }
   0x3   :  { %16 = vsyncpa [#allocation4], 0 }
   0x4   :  { %17 = vsyncpa [#allocation12], 0  ;;  %s2419_s24 = smov [#allocation5]   ;;  %s2420_s26 = smov [#allocation2]  }
   0x5   :  { %s39_s25 = sshll.u32 %s2419_s24, 4  ;;  %s25_s27 = sshll.u32 %s2420_s26, 4  ;;  %s40_s25 = int_to_ptr.vmem [resolvable:$true] %s39_s25  ;;  %s2476_s27 = int_to_ptr.vmem [resolvable:$true] %s25_s27 }
   0x6   :  { %s2277_s30 = scalar_lea.hbm %s3096_s3, 256 }
   0x7   :  { %p2278_p0 = scmp.ne.s32.totalorder %s3096_s3, %s2277_s30  ;;  %p2281_p1 = scmp.lt.u32.totalorder %s2277_s30, %s3096_s3 }
   0x9   :  { %p2283_p2 = pnand %p2281_p1, %p2278_p0 }
   0xb   :  { %2286 = shalt.err (!%p2283_p2)
}
   0xc   :  { %s2287_s12 = scalar_lea.vmem %s40_s25, 256  ;;  %p2292_p4 = scmp.lt.s32.totalorder %s40_s25, %s40_s25 }
   0xd   :  { %p2288_p3 = scmp.ne.s32.totalorder %s40_s25, %s2287_s12  ;;  %p2293_p5 = scmp.lt.s32.totalorder %s2287_s12, %s2287_s12 }
   0xf   :  { %p2294_p6 = por %p2293_p5, %p2292_p4 }
  0x11   :  { %p2295_p7 = pnand %p2294_p6, %p2288_p3 }
  0x13   :  { %2298 = shalt.err (!%p2295_p7)
}
  0x14   :  { %s2421_s13 = smov 128   ;;  %s2422_s14 = smov 8  }
  0x15   :  { %45 = dma.hbm_to_vmem [thread:$0]  %s3096_s3, 256, %s40_s25, [#allocation6], %s2421_s13, %s2421_s13, %s2422_s14  }
  0x16   :  { %s2299_s19 = scalar_lea.hbm %s3094_s1, 2048 }
  0x17   :  { %p2300_p8 = scmp.ne.s32.totalorder %s3094_s1, %s2299_s19  ;;  %p2303_p9 = scmp.lt.u32.totalorder %s2299_s19, %s3094_s1 }
  0x19   :  { %p2305_p10 = pnand %p2303_p9, %p2300_p8 }
  0x1b   :  { %2308 = shalt.err (!%p2305_p10)
}
  0x1c   :  { %s2309_s24 = scalar_lea.vmem %s2476_s27, 2048  ;;  %p2314_p12 = scmp.lt.s32.totalorder %s2476_s27, %s2476_s27 }
  0x1d   :  { %p2310_p11 = scmp.ne.s32.totalorder %s2476_s27, %s2309_s24  ;;  %p2315_p13 = scmp.lt.s32.totalorder %s2309_s24, %s2309_s24 }
  0x1f   :  { %p2316_p0 = por %p2315_p13, %p2314_p12 }
  0x21   :  { %p2317_p1 = pnand %p2316_p0, %p2310_p11 }
  0x23   :  { %2320 = shalt.err (!%p2317_p1)
}
  0x24   :  { %31 = dma.hbm_to_vmem [thread:$0]  %s3094_s1, 2048, %s2476_s27, [#allocation3], %s2421_s13, %s2421_s13, %s2422_s14  }
  0x25   :  { %s2423_s26 = smov [#allocation7]   ;;  %s2424_s29 = smov [#allocation8]  }
  0x26   :  { %s51_s28 = sshll.u32 %s2423_s26, 4  ;;  %s63_s30 = sshll.u32 %s2424_s29, 4  ;;  %s52_s28 = int_to_ptr.vmem [resolvable:$true] %s51_s28  ;;  %s2513_s30 = int_to_ptr.vmem [resolvable:$true] %s63_s30 }
  0x27   :  { %s2321_s10 = scalar_lea.hbm %s3097_s4, 256 }
  0x28   :  { %p2322_p2 = scmp.ne.s32.totalorder %s3097_s4, %s2321_s10  ;;  %p2325_p3 = scmp.lt.u32.totalorder %s2321_s10, %s3097_s4 }
  0x2a   :  { %p2327_p4 = pnand %p2325_p3, %p2322_p2 }
  0x2c   :  { %2330 = shalt.err (!%p2327_p4)
}
  0x2d   :  { %s2331_s1 = scalar_lea.vmem %s52_s28, 256  ;;  %p2336_p6 = scmp.lt.s32.totalorder %s52_s28, %s52_s28 }
  0x2e   :  { %p2332_p5 = scmp.ne.s32.totalorder %s52_s28, %s2331_s1  ;;  %p2337_p7 = scmp.lt.s32.totalorder %s2331_s1, %s2331_s1 }
  0x30   :  { %p2338_p8 = por %p2337_p7, %p2336_p6 }
  0x32   :  { %p2339_p9 = pnand %p2338_p8, %p2332_p5 }
  0x34   :  { %2342 = shalt.err (!%p2339_p9)
}
  0x35   :  { %57 = dma.hbm_to_vmem [thread:$0]  %s3097_s4, 256, %s52_s28, [#allocation6], %s2421_s13, %s2421_s13, %s2422_s14  }
  0x36   :  { %s2343_s20 = scalar_lea.hbm %s3098_s5, 256 }
  0x37   :  { %p2344_p10 = scmp.ne.s32.totalorder %s3098_s5, %s2343_s20  ;;  %p2347_p11 = scmp.lt.u32.totalorder %s2343_s20, %s3098_s5 }
  0x39   :  { %p2349_p12 = pnand %p2347_p11, %p2344_p10 }
  0x3b   :  { %2352 = shalt.err (!%p2349_p12)
}
  0x3c   :  { %s2353_s3 = scalar_lea.vmem %s2513_s30, 256  ;;  %p2358_p0 = scmp.lt.s32.totalorder %s2513_s30, %s2513_s30 }
  0x3d   :  { %p2354_p13 = scmp.ne.s32.totalorder %s2513_s30, %s2353_s3  ;;  %p2359_p1 = scmp.lt.s32.totalorder %s2353_s3, %s2353_s3 }
  0x3f   :  { %p2360_p2 = por %p2359_p1, %p2358_p0 }
  0x41   :  { %p2361_p3 = pnand %p2360_p2, %p2354_p13 }
  0x43   :  { %2364 = shalt.err (!%p2361_p3)
}
  0x44   :  { %69 = dma.hbm_to_vmem [thread:$0]  %s3098_s5, 256, %s2513_s30, [#allocation9], %s2421_s13, %s2421_s13, %s2422_s14  }
  0x45   :  { %2409 = dma.done.wait [#allocation3], 2048  }
  0x46   :  { %2410 = vsyncadd [#allocation3], 4294965248 }
  0x47   :  { %2411 = dma.done.wait [#allocation6], 512  }
  0x48   :  { %2412 = vsyncadd [#allocation6], 4294966784 }
  0x49   :  { %2413 = dma.done.wait [#allocation9], 256  }
  0x4a   :  { %2414 = vsyncadd [#allocation9], 4294967040  ;;  %v2425_v0 = vmov 0.0|0.0   ;;  %vm2426_vm0 = vmmov 0   ;;  %v2427_v1 = vmov 0.0   ;;  %v83_v2 = vld [vmem:[%s3095_s2] sm:$0xff] }
  0x4b   :  { %2114 = vmatprep.subr.bf16.mxu0 %v2425_v0  ;;  %2006 = vmatprep.mubr.msk.f32.mxu0 %vm2426_vm0, %v2427_v1  ;;  %v84_v3 = vld [vmem:[%s3095_s2 + $0x8] sm:$0xff]  ;;  %v85_v5 = vld [vmem:[#allocation5] sm:$0xff]  ;;  %v86_v6 = vld [vmem:[#allocation5 + $0x8] sm:$0xff]  ;;  %vm94_vm1 = vcmask 130048   ;;  %s2428_s30 = smov 16   ;;  %v2429_v20 = vmov 0  }
  0x4c   :  { %2117 = vmatprep.subr.bf16.mxu1 %v2425_v0  ;;  %2013 = vmatprep.mubr.msk.f32.mxu1 %vm2426_vm0, %v2427_v1  ;;  %v2562_v4 = vpack.c.bf16 %v84_v3, %v83_v2  ;;  %v2564_v7 = vpack.c.bf16 %v86_v6, %v85_v5  ;;  %v88_v8 = vld [vmem:[#allocation8] sm:$0xff]  ;;  %v2567_v9 = vld [vmem:[#allocation7] sm:$0xff]  ;;  %v2571_v10 = vld [vmem:[#allocation7 + $0x8] sm:$0xff]  ;;  %s2430_s2 = smov 96   ;;  %s2432_s10 = smov 48  }
  0x4d   :  { %253 = vrot.lane.b32.xlu1 %v88_v8, %s2428_s30  ;;  %v92_v11 = vld [vmem:[#allocation8 + $0x8] sm:$0xff]  ;;  %v93_v12 = vld [vmem:[#allocation2] sm:$0xff]  ;;  %v170_v13 = vld [vmem:[#allocation2 + $0x78] sm:$0xff]  ;;  %2179 = vset.pattern.permute.xlu0 %v2429_v20  ;;  %s2433_s11 = smov 80   ;;  %s2434_s12 = smov [#allocation10]  }
  0x4e   :  { %2116 = vmatpush3.bf16.msra.mxu0 %v2562_v4  ;;  %2119 = vmatpush3.bf16.msra.mxu1 %v2564_v7  ;;  %v2595_v28 = vld [vmem:[%s3093_s0] sm:$0xff]  ;;  %s2431_s0 = smov 32   ;;  %v333_v60 = vld [vmem:[#allocation2 + $0x8] sm:$0xff]  ;;  %s1908_s15 = sshll.u32 %s2434_s12, 4  ;;  %s1909_s15 = int_to_ptr.vmem [resolvable:$true] %s1908_s15 }
  0x4f   :  { %2120 = vmatprep.subr.bf16.mxu0 %v2425_v0  ;;  %2123 = vmatprep.subr.bf16.mxu1 %v2425_v0  ;;  %vm245_vm2 = vcmp.gt.s32.totalorder %v2595_v28, 0  ;;  %vm246_vm3 = vcmp.gt.s32.totalorder %v2595_v28, 7  ;;  %v411_v2 = vld [vmem:[#allocation2 + $0x70] sm:$0xff]  ;;  %vm488_vm6 = vcmp.gt.s32.totalorder %v2595_v28, 1  ;;  %vm489_vm7 = vcmp.gt.s32.totalorder %v2595_v28, 6  ;;  %s2435_s16 = smov [#allocation11]   ;;  %p2370_p5 = scmp.lt.s32.totalorder %s1909_s15, %s1909_s15 }
  0x50   :  { %2180 = vset.pattern.permute.xlu1 %v2429_v20  ;;  %v273_v35 = vsel %vm245_vm2, 1, %v2429_v20  ;;  %v310_v37 = vsel %vm246_vm3, 1, %v2429_v20  ;;  %vm718_vm10 = vcmp.gt.s32.totalorder %v2595_v28, 2  ;;  %vm719_vm11 = vcmp.gt.s32.totalorder %v2595_v28, 5  ;;  %s1920_s1 = sshll.u32 %s2435_s16, 4  ;;  %s2365_s27 = scalar_lea.vmem %s1909_s15, 2048  ;;  %s1921_s1 = int_to_ptr.vmem [resolvable:$true] %s1920_s1 }
  0x51   :  { %2007 = vmatmul.mubr.msk.f32.vlgmr.msra.gmra.mrb[0].mxu0 %vm94_vm1, %v2567_v9  ;;  %2014 = vmatmul.mubr.msk.f32.vlgmr.msra.gmra.mrb[0].mxu1 %vm94_vm1, %v2571_v10  ;;  %vm948_vm14 = vcmp.gt.s32.totalorder %v2595_v28, 3  ;;  %vm949_vm15 = vcmp.gt.s32.totalorder %v2595_v28, 4  ;;  %p2366_p4 = scmp.ne.s32.totalorder %s1909_s15, %s2365_s27  ;;  %p2371_p6 = scmp.lt.s32.totalorder %s2365_s27, %s2365_s27 }
  0x52   :  { %290 = vrot.lane.b32.xlu1 %v92_v11, %s2428_s30  ;;  %2122 = vmatpush3.bf16.msra.mxu0 %v2562_v4 }
  0x53   :  { %2020 = vmatprep.mubr.msk.f32.mxu0 %vm2426_vm0, %v2427_v1  ;;  %2125 = vmatpush3.bf16.msra.mxu1 %v2564_v7  ;;  %p2372_p7 = por %p2371_p6, %p2370_p5 }
  0x54   :  { %2027 = vmatprep.mubr.msk.f32.mxu1 %vm2426_vm0, %v2427_v1  ;;  %2126 = vmatprep.subr.bf16.mxu0 %v2425_v0 }
  0x55   :  { %2129 = vmatprep.subr.bf16.mxu1 %v2425_v0  ;;  %p2373_p8 = pnand %p2372_p7, %p2366_p4 }
  0xbf   :  { %v2603_v38 = vpop.permute.xlu1 %253 }
  0xc4   :  { %v2606_v40 = vpop.permute.xlu1 %290 }
 0x124   :  { %v164_v14 = vpop.f32.mrb[0].mxu0  ;;  %v240_v17 = vpop.f32.mrb[0].mxu1 }
 0x125   :  { %v168_v15 = vadd.f32 %v164_v14, %v93_v12  ;;  %v2008_v16 = vpop.f32.mrb[1].mxu0  ;;  %v244_v18 = vadd.f32 %v240_v17, %v170_v13  ;;  %v2015_v19 = vpop.f32.mrb[1].mxu1 }
 0x127   :  { %2181 = vtanh.f32 %v168_v15  ;;  %v247_v23 = vmul.f32 0.5, %v168_v15  ;;  %v284_v24 = vmul.f32 0.5, %v244_v18 }
 0x128   :  { %2183 = vtanh.f32 %v244_v18 }
 0x129   :  { %2185 = vtanh.f32 %v247_v23 }
 0x12a   :  { %2187 = vtanh.f32 %v284_v24  ;;  %v542_v24 = vsel %vm489_vm7, 1, %v2429_v20 }
 0x131   :  { %v2182_v21 = vpop.eup %2181 }
 0x132   :  { %258 = vrot.lane.b32.xlu0 %v2182_v21, %s2430_s2  ;;  %v2184_v22 = vpop.eup %2183 }
 0x133   :  { %v2186_v25 = vpop.eup %2185 }
 0x134   :  { %v249_v26 = vmul.f32 0.5, %v2186_v25  ;;  %v2188_v27 = vpop.eup %2187 }
 0x135   :  { %v286_v29 = vmul.f32 0.5, %v2188_v27 }
 0x136   :  { %295 = vrot.lane.b32.xlu0 %v2184_v22, %s2430_s2  ;;  %v250_v30 = vadd.f32 0.5, %v249_v26  ;;  %v512_v22 = vsel %vm488_vm6, 1, %v2429_v20 }
 0x137   :  { %v287_v33 = vadd.f32 0.5, %v286_v29 }
 0x138   :  { %v256_v39 = vmul.f32 %v2603_v38, %v250_v30 }
 0x139   :  { %v293_v43 = vmul.f32 %v2606_v40, %v287_v33 }
 0x1a4   :  { %v259_v31 = vpop.permute.xlu0 %258 }
 0x1a5   :  { %v261_v32 = vmul.f32 %v259_v31, %v250_v30 }
 0x1a7   :  { %263 = vrot.lane.b32.xlu0 %v261_v32, %s2428_s30 }
 0x1a8   :  { %v296_v34 = vpop.permute.xlu0 %295 }
 0x1a9   :  { %v298_v36 = vmul.f32 %v296_v34, %v287_v33 }
 0x1ab   :  { %300 = vrot.lane.b32.xlu1 %v298_v36, %s2428_s30  ;;  %275 = vperm.xlu0 %2179, %v273_v35  }
 0x1af   :  { %312 = vperm.xlu1 %2180, %v310_v37  }
 0x219   :  { %v264_v41 = vpop.permute.xlu0 %263 }
 0x21a   :  { %v2608_v42 = vadd.f32 %v264_v41, %v256_v39 }
 0x21c   :  { %2189 = vtanh.f32 %v2608_v42 }
 0x21d   :  { %v301_v44 = vpop.permute.xlu1 %300 }
 0x21e   :  { %v2612_v45 = vadd.f32 %v301_v44, %v293_v43 }
 0x220   :  { %2191 = vtanh.f32 %v2612_v45 }
 0x226   :  { %v2190_v46 = vpop.eup %2189 }
 0x227   :  { %269 = vrot.lane.b32.xlu1 %v2190_v46, %s2431_s0  ;;  %v563_v46 = vld [vmem:[#allocation2 + $0x10] sm:$0xff] }
 0x22a   :  { %v2192_v47 = vpop.eup %2191  ;;  %v2621_v49 = vpop.permute.xlu0 %275 }
 0x22b   :  { %278 = vrot.lane.b32.xlu1 %v2567_v9, %s2432_s10  ;;  %306 = vrot.lane.b32.xlu0 %v2192_v47, %s2431_s0  ;;  %vm277_vm4 = vcmp.eq.s32.totalorder %v2621_v49, 1 }
 0x22c   :  { %v2665_v25 = vsel %vm277_vm4, %v2608_v42, %v2603_v38 }
 0x22e   :  { %v2619_v48 = vpop.permute.xlu1 %312 }
 0x22f   :  { %315 = vrot.lane.b32.xlu0 %v2571_v10, %s2432_s10  ;;  %vm314_vm5 = vcmp.eq.s32.totalorder %v2619_v48, 1 }
 0x299   :  { %v270_v50 = vpop.permute.xlu1 %269 }
 0x29a   :  { %v2623_v51 = vmul.f32 %v270_v50, %v250_v30  ;;  %v2674_v30 = vsel %vm314_vm5, %v2612_v45, %v2606_v40 }
 0x29d   :  { %v279_v52 = vpop.permute.xlu1 %278  ;;  %v307_v53 = vpop.permute.xlu0 %306 }
 0x29e   :  { %v2629_v54 = vsel %vm277_vm4, %v2623_v51, %v279_v52  ;;  %v2633_v55 = vmul.f32 %v307_v53, %v287_v33  ;;  %v641_v53 = vld [vmem:[#allocation2 + $0x68] sm:$0xff] }
 0x29f   :  { %335 = vrot.lane.b32.xlu1 %v2629_v54, %s2433_s11 }
 0x2a1   :  { %v316_v56 = vpop.permute.xlu0 %315 }
 0x2a2   :  { %v2639_v57 = vsel %vm314_vm5, %v2633_v55, %v316_v56 }
 0x2a3   :  { %413 = vrot.lane.b32.xlu0 %v2639_v57, %s2433_s11 }
 0x311   :  { %v336_v58 = vpop.permute.xlu1 %335 }
 0x312   :  { %2021 = vmatmul.mubr.msk.f32.vlgmr.msra.gmra.mrb[2].mxu0 %vm94_vm1, %v336_v58 }
 0x313   :  { %2128 = vmatpush3.bf16.msra.mxu0 %v2562_v4  ;;  %2034 = vmatprep.mubr.msk.f32.mxu0 %vm2426_vm0, %v2427_v1 }
 0x314   :  { %2132 = vmatprep.subr.bf16.mxu0 %v2425_v0 }
 0x315   :  { %v414_v59 = vpop.permute.xlu0 %413 }
 0x316   :  { %2028 = vmatmul.mubr.msk.f32.vlgmr.msra.gmra.mrb[2].mxu1 %vm94_vm1, %v414_v59 }
 0x317   :  { %2131 = vmatpush3.bf16.msra.mxu1 %v2564_v7  ;;  %2041 = vmatprep.mubr.msk.f32.mxu1 %vm2426_vm0, %v2427_v1 }
 0x318   :  { %2135 = vmatprep.subr.bf16.mxu1 %v2425_v0 }
 0x3e5   :  { %v405_v61 = vpop.f32.mrb[2].mxu0 }
 0x3e6   :  { %v409_v62 = vadd.f32 %v405_v61, %v333_v60  ;;  %v2022_v63 = vpop.f32.mrb[3].mxu0 }
 0x3e8   :  { %2193 = vtanh.f32 %v409_v62  ;;  %v490_v10 = vmul.f32 0.5, %v409_v62 }
 0x3e9   :  { %v483_v3 = vpop.f32.mrb[2].mxu1 }
 0x3ea   :  { %v487_v5 = vadd.f32 %v483_v3, %v411_v2  ;;  %v2029_v6 = vpop.f32.mrb[3].mxu1 }
 0x3ec   :  { %2195 = vtanh.f32 %v487_v5  ;;  %v520_v11 = vmul.f32 0.5, %v487_v5 }
 0x3ed   :  { %2197 = vtanh.f32 %v490_v10 }
 0x3ee   :  { %2199 = vtanh.f32 %v520_v11  ;;  %v742_v11 = vsel %vm718_vm10, 1, %v2429_v20 }
 0x3f2   :  { %v2194_v8 = vpop.eup %2193 }
 0x3f3   :  { %497 = vrot.lane.b32.xlu1 %v2194_v8, %s2430_s2 }
 0x3f6   :  { %v2196_v9 = vpop.eup %2195 }
 0x3f7   :  { %527 = vrot.lane.b32.xlu0 %v2196_v9, %s2430_s2  ;;  %v2198_v12 = vpop.eup %2197 }
 0x3f8   :  { %v492_v13 = vmul.f32 0.5, %v2198_v12  ;;  %v2200_v14 = vpop.eup %2199 }
 0x3f9   :  { %v522_v16 = vmul.f32 0.5, %v2200_v14 }
 0x3fa   :  { %v493_v15 = vadd.f32 0.5, %v492_v13  ;;  %v772_v13 = vsel %vm719_vm11, 1, %v2429_v20 }
 0x3fb   :  { %v523_v19 = vadd.f32 0.5, %v522_v16 }
 0x3fc   :  { %v495_v26 = vmul.f32 %v493_v15, %v2665_v25 }
 0x3fd   :  { %v525_v31 = vmul.f32 %v523_v19, %v2674_v30 }
 0x465   :  { %v498_v17 = vpop.permute.xlu1 %497 }
 0x466   :  { %v500_v18 = vmul.f32 %v498_v17, %v493_v15 }
 0x468   :  { %502 = vrot.lane.b32.xlu1 %v500_v18, %s2428_s30 }
 0x469   :  { %v528_v21 = vpop.permute.xlu0 %527 }
 0x46a   :  { %v530_v23 = vmul.f32 %v528_v21, %v523_v19 }
 0x46c   :  { %514 = vperm.xlu1 %2180, %v512_v22   ;;  %532 = vrot.lane.b32.xlu0 %v530_v23, %s2428_s30 }
 0x470   :  { %544 = vperm.xlu0 %2179, %v542_v24  }
 0x4da   :  { %v503_v27 = vpop.permute.xlu1 %502 }
 0x4db   :  { %v2668_v29 = vadd.f32 %v503_v27, %v495_v26 }
 0x4dd   :  { %2201 = vtanh.f32 %v2668_v29 }
 0x4de   :  { %v533_v32 = vpop.permute.xlu0 %532 }
 0x4df   :  { %v2678_v33 = vadd.f32 %v533_v32, %v525_v31 }
 0x4e1   :  { %2203 = vtanh.f32 %v2678_v33 }
 0x4e7   :  { %v2202_v34 = vpop.eup %2201 }
 0x4e8   :  { %508 = vrot.lane.b32.xlu1 %v2202_v34, %s2431_s0 }
 0x4eb   :  { %v2204_v35 = vpop.eup %2203  ;;  %v2683_v36 = vpop.permute.xlu1 %514 }
 0x4ec   :  { %538 = vrot.lane.b32.xlu0 %v2204_v35, %s2431_s0  ;;  %vm516_vm8 = vcmp.eq.s32.totalorder %v2683_v36, 1 }
 0x4ed   :  { %v2731_v14 = vsel %vm516_vm8, %v2668_v29, %v2665_v25 }
 0x4ef   :  { %v2685_v37 = vpop.permute.xlu0 %544 }
 0x4f0   :  { %vm546_vm9 = vcmp.eq.s32.totalorder %v2685_v37, 1 }
 0x4f1   :  { %v2740_v18 = vsel %vm546_vm9, %v2678_v33, %v2674_v30 }
 0x55a   :  { %v509_v38 = vpop.permute.xlu1 %508 }
 0x55b   :  { %v2687_v39 = vmul.f32 %v509_v38, %v493_v15  ;;  %v793_v38 = vld [vmem:[#allocation2 + $0x18] sm:$0xff] }
 0x55d   :  { %v2694_v40 = vsel %vm516_vm8, %v2687_v39, %v2629_v54 }
 0x55e   :  { %565 = vrot.lane.b32.xlu1 %v2694_v40, %s2433_s11  ;;  %v539_v41 = vpop.permute.xlu0 %538 }
 0x55f   :  { %v2698_v42 = vmul.f32 %v539_v41, %v523_v19 }
 0x561   :  { %v2705_v43 = vsel %vm546_vm9, %v2698_v42, %v2639_v57 }
 0x562   :  { %643 = vrot.lane.b32.xlu0 %v2705_v43, %s2433_s11 }
 0x5d0   :  { %v566_v44 = vpop.permute.xlu1 %565 }
 0x5d1   :  { %2035 = vmatmul.mubr.msk.f32.vlgmr.msra.gmra.mrb[4].mxu0 %vm94_vm1, %v566_v44  ;;  %v871_v44 = vld [vmem:[#allocation2 + $0x60] sm:$0xff] }
 0x5d2   :  { %2134 = vmatpush3.bf16.msra.mxu0 %v2562_v4  ;;  %2048 = vmatprep.mubr.msk.f32.mxu0 %vm2426_vm0, %v2427_v1 }
 0x5d3   :  { %2138 = vmatprep.subr.bf16.mxu0 %v2425_v0 }
 0x5d4   :  { %v644_v45 = vpop.permute.xlu0 %643 }
 0x5d5   :  { %2042 = vmatmul.mubr.msk.f32.vlgmr.msra.gmra.mrb[4].mxu1 %vm94_vm1, %v644_v45 }
 0x5d6   :  { %2137 = vmatpush3.bf16.msra.mxu1 %v2564_v7  ;;  %2055 = vmatprep.mubr.msk.f32.mxu1 %vm2426_vm0, %v2427_v1 }
 0x5d7   :  { %2141 = vmatprep.subr.bf16.mxu1 %v2425_v0 }
 0x6a4   :  { %v635_v47 = vpop.f32.mrb[4].mxu0 }
 0x6a5   :  { %v639_v50 = vadd.f32 %v635_v47, %v563_v46  ;;  %v2036_v52 = vpop.f32.mrb[5].mxu0 }
 0x6a7   :  { %2205 = vtanh.f32 %v639_v50  ;;  %v720_v60 = vmul.f32 0.5, %v639_v50 }
 0x6a8   :  { %v713_v54 = vpop.f32.mrb[4].mxu1 }
 0x6a9   :  { %v717_v56 = vadd.f32 %v713_v54, %v641_v53  ;;  %v2043_v57 = vpop.f32.mrb[5].mxu1 }
 0x6ab   :  { %2207 = vtanh.f32 %v717_v56  ;;  %v750_v61 = vmul.f32 0.5, %v717_v56 }
 0x6ac   :  { %2209 = vtanh.f32 %v720_v60 }
 0x6ad   :  { %2211 = vtanh.f32 %v750_v61 }
 0x6b1   :  { %v2206_v58 = vpop.eup %2205 }
 0x6b2   :  { %727 = vrot.lane.b32.xlu1 %v2206_v58, %s2430_s2 }
 0x6b5   :  { %v2208_v59 = vpop.eup %2207 }
 0x6b6   :  { %757 = vrot.lane.b32.xlu0 %v2208_v59, %s2430_s2  ;;  %v2210_v62 = vpop.eup %2209 }
 0x6b7   :  { %v722_v63 = vmul.f32 0.5, %v2210_v62  ;;  %v2212_v2 = vpop.eup %2211 }
 0x6b8   :  { %v752_v5 = vmul.f32 0.5, %v2212_v2 }
 0x6b9   :  { %v723_v3 = vadd.f32 0.5, %v722_v63 }
 0x6ba   :  { %v753_v9 = vadd.f32 0.5, %v752_v5 }
 0x6bb   :  { %v725_v15 = vmul.f32 %v723_v3, %v2731_v14 }
 0x6bc   :  { %v755_v19 = vmul.f32 %v753_v9, %v2740_v18 }
 0x724   :  { %v728_v6 = vpop.permute.xlu1 %727 }
 0x725   :  { %v730_v8 = vmul.f32 %v728_v6, %v723_v3  ;;  %v1002_v6 = vsel %vm949_vm15, 1, %v2429_v20 }
 0x727   :  { %732 = vrot.lane.b32.xlu1 %v730_v8, %s2428_s30 }
 0x728   :  { %v758_v10 = vpop.permute.xlu0 %757 }
 0x729   :  { %v760_v12 = vmul.f32 %v758_v10, %v753_v9 }
 0x72b   :  { %744 = vperm.xlu1 %2180, %v742_v11   ;;  %762 = vrot.lane.b32.xlu0 %v760_v12, %s2428_s30 }
 0x72f   :  { %774 = vperm.xlu0 %2179, %v772_v13  }
 0x799   :  { %v733_v16 = vpop.permute.xlu1 %732 }
 0x79a   :  { %v2734_v17 = vadd.f32 %v733_v16, %v725_v15 }
 0x79c   :  { %2213 = vtanh.f32 %v2734_v17 }
 0x79d   :  { %v763_v21 = vpop.permute.xlu0 %762 }
 0x79e   :  { %v2744_v22 = vadd.f32 %v763_v21, %v755_v19 }
 0x7a0   :  { %2215 = vtanh.f32 %v2744_v22 }
 0x7a6   :  { %v2214_v23 = vpop.eup %2213 }
 0x7a7   :  { %738 = vrot.lane.b32.xlu1 %v2214_v23, %s2431_s0 }
 0x7aa   :  { %v2216_v24 = vpop.eup %2215  ;;  %v2749_v25 = vpop.permute.xlu1 %744 }
 0x7ab   :  { %768 = vrot.lane.b32.xlu0 %v2216_v24, %s2431_s0  ;;  %vm746_vm12 = vcmp.eq.s32.totalorder %v2749_v25, 1 }
 0x7ac   :  { %v2797_v8 = vsel %vm746_vm12, %v2734_v17, %v2731_v14 }
 0x7ae   :  { %v2751_v26 = vpop.permute.xlu0 %774 }
 0x7af   :  { %vm776_vm13 = vcmp.eq.s32.totalorder %v2751_v26, 1 }
 0x7b0   :  { %v2806_v28 = vsel %vm776_vm13, %v2744_v22, %v2740_v18 }
 0x819   :  { %v739_v27 = vpop.permute.xlu1 %738 }
 0x81a   :  { %v2753_v29 = vmul.f32 %v739_v27, %v723_v3  ;;  %v972_v3 = vsel %vm948_vm14, 1, %v2429_v20 }
 0x81c   :  { %v2760_v30 = vsel %vm746_vm12, %v2753_v29, %v2694_v40 }
 0x81d   :  { %795 = vrot.lane.b32.xlu1 %v2760_v30, %s2433_s11  ;;  %v769_v31 = vpop.permute.xlu0 %768 }
 0x81e   :  { %v2764_v32 = vmul.f32 %v769_v31, %v753_v9  ;;  %v1023_v31 = vld [vmem:[#allocation2 + $0x20] sm:$0xff] }
 0x820   :  { %v2771_v33 = vsel %vm776_vm13, %v2764_v32, %v2705_v43 }
 0x821   :  { %873 = vrot.lane.b32.xlu0 %v2771_v33, %s2433_s11 }
 0x88f   :  { %v796_v34 = vpop.permute.xlu1 %795 }
 0x890   :  { %2049 = vmatmul.mubr.msk.f32.vlgmr.msra.gmra.mrb[6].mxu0 %vm94_vm1, %v796_v34 }
 0x891   :  { %2140 = vmatpush3.bf16.msra.mxu0 %v2562_v4  ;;  %2062 = vmatprep.mubr.msk.f32.mxu0 %vm2426_vm0, %v2427_v1 }
 0x892   :  { %2144 = vmatprep.subr.bf16.mxu0 %v2425_v0 }
 0x893   :  { %v874_v35 = vpop.permute.xlu0 %873 }
 0x894   :  { %2056 = vmatmul.mubr.msk.f32.vlgmr.msra.gmra.mrb[6].mxu1 %vm94_vm1, %v874_v35 }
 0x895   :  { %2143 = vmatpush3.bf16.msra.mxu1 %v2564_v7  ;;  %2069 = vmatprep.mubr.msk.f32.mxu1 %vm2426_vm0, %v2427_v1 }
 0x896   :  { %2147 = vmatprep.subr.bf16.mxu1 %v2425_v0 }
 0x963   :  { %v865_v40 = vpop.f32.mrb[6].mxu0 }
 0x964   :  { %v869_v41 = vadd.f32 %v865_v40, %v793_v38  ;;  %v2050_v43 = vpop.f32.mrb[7].mxu0  ;;  %v1101_v38 = vld [vmem:[#allocation2 + $0x58] sm:$0xff] }
 0x966   :  { %2217 = vtanh.f32 %v869_v41  ;;  %v950_v53 = vmul.f32 0.5, %v869_v41 }
 0x967   :  { %v943_v45 = vpop.f32.mrb[6].mxu1 }
 0x968   :  { %v947_v46 = vadd.f32 %v943_v45, %v871_v44  ;;  %v2057_v47 = vpop.f32.mrb[7].mxu1 }
 0x96a   :  { %2219 = vtanh.f32 %v947_v46  ;;  %v980_v54 = vmul.f32 0.5, %v947_v46 }
 0x96b   :  { %2221 = vtanh.f32 %v950_v53 }
 0x96c   :  { %2223 = vtanh.f32 %v980_v54 }
 0x970   :  { %v2218_v50 = vpop.eup %2217 }
 0x971   :  { %957 = vrot.lane.b32.xlu1 %v2218_v50, %s2430_s2 }
 0x974   :  { %v2220_v52 = vpop.eup %2219 }
 0x975   :  { %987 = vrot.lane.b32.xlu0 %v2220_v52, %s2430_s2  ;;  %v2222_v56 = vpop.eup %2221 }
 0x976   :  { %v952_v57 = vmul.f32 0.5, %v2222_v56  ;;  %v2224_v58 = vpop.eup %2223 }
 0x977   :  { %v982_v60 = vmul.f32 0.5, %v2224_v58 }
 0x978   :  { %v953_v59 = vadd.f32 0.5, %v952_v57 }
 0x979   :  { %v983_v63 = vadd.f32 0.5, %v982_v60 }
 0x97a   :  { %v955_v9 = vmul.f32 %v953_v59, %v2797_v8 }
 0x97b   :  { %v985_v20 = vmul.f32 %v983_v63, %v2806_v28 }
 0x9e3   :  { %v958_v61 = vpop.permute.xlu1 %957 }
 0x9e4   :  { %v960_v62 = vmul.f32 %v958_v61, %v953_v59 }
 0x9e6   :  { %962 = vrot.lane.b32.xlu1 %v960_v62, %s2428_s30 }
 0x9e7   :  { %v988_v2 = vpop.permute.xlu0 %987 }
 0x9e8   :  { %v990_v5 = vmul.f32 %v988_v2, %v983_v63 }
 0x9ea   :  { %974 = vperm.xlu1 %2180, %v972_v3   ;;  %992 = vrot.lane.b32.xlu0 %v990_v5, %s2428_s30 }
 0x9ee   :  { %1004 = vperm.xlu0 %2179, %v1002_v6  }
 0xa58   :  { %v963_v10 = vpop.permute.xlu1 %962 }
 0xa59   :  { %v2800_v11 = vadd.f32 %v963_v10, %v955_v9 }
 0xa5b   :  { %2225 = vtanh.f32 %v2800_v11 }
 0xa5c   :  { %v993_v12 = vpop.permute.xlu0 %992 }
 0xa5d   :  { %v2810_v13 = vadd.f32 %v993_v12, %v985_v20 }
 0xa5f   :  { %2227 = vtanh.f32 %v2810_v13 }
 0xa65   :  { %v2226_v14 = vpop.eup %2225 }
 0xa66   :  { %968 = vrot.lane.b32.xlu1 %v2226_v14, %s2431_s0 }
 0xa69   :  { %v2228_v15 = vpop.eup %2227  ;;  %v2815_v16 = vpop.permute.xlu1 %974 }
 0xa6a   :  { %998 = vrot.lane.b32.xlu0 %v2228_v15, %s2431_s0  ;;  %vm976_vm2 = vcmp.eq.s32.totalorder %v2815_v16, 1 }
 0xa6b   :  { %v2859_v62 = vsel %vm976_vm2, %v2800_v11, %v2797_v8 }
 0xa6d   :  { %v2817_v17 = vpop.permute.xlu0 %1004 }
 0xa6e   :  { %vm1006_vm3 = vcmp.eq.s32.totalorder %v2817_v17, 1 }
 0xa6f   :  { %v2866_v5 = vsel %vm1006_vm3, %v2810_v13, %v2806_v28 }
 0xad8   :  { %v969_v18 = vpop.permute.xlu1 %968 }
 0xad9   :  { %v2819_v19 = vmul.f32 %v969_v18, %v953_v59 }
 0xadb   :  { %v2826_v21 = vsel %vm976_vm2, %v2819_v19, %v2760_v30 }
 0xadc   :  { %1025 = vrot.lane.b32.xlu1 %v2826_v21, %s2433_s11  ;;  %v999_v22 = vpop.permute.xlu0 %998 }
 0xadd   :  { %v2830_v23 = vmul.f32 %v999_v22, %v983_v63  ;;  %v1241_v22 = vld [vmem:[#allocation2 + $0x28] sm:$0xff] }
 0xadf   :  { %v2837_v24 = vsel %vm1006_vm3, %v2830_v23, %v2771_v33 }
 0xae0   :  { %1103 = vrot.lane.b32.xlu0 %v2837_v24, %s2433_s11 }
 0xb4e   :  { %v1026_v27 = vpop.permute.xlu1 %1025 }
 0xb4f   :  { %2063 = vmatmul.mubr.msk.f32.vlgmr.msra.gmra.mrb[8].mxu0 %vm94_vm1, %v1026_v27 }
 0xb50   :  { %2146 = vmatpush3.bf16.msra.mxu0 %v2562_v4  ;;  %2076 = vmatprep.mubr.msk.f32.mxu0 %vm2426_vm0, %v2427_v1 }
 0xb51   :  { %2150 = vmatprep.subr.bf16.mxu0 %v2425_v0 }
 0xb52   :  { %v1104_v30 = vpop.permute.xlu0 %1103 }
 0xb53   :  { %2070 = vmatmul.mubr.msk.f32.vlgmr.msra.gmra.mrb[8].mxu1 %vm94_vm1, %v1104_v30 }
 0xb54   :  { %2149 = vmatpush3.bf16.msra.mxu1 %v2564_v7  ;;  %2083 = vmatprep.mubr.msk.f32.mxu1 %vm2426_vm0, %v2427_v1 }
 0xb55   :  { %2153 = vmatprep.subr.bf16.mxu1 %v2425_v0 }
 0xc22   :  { %v1095_v33 = vpop.f32.mrb[8].mxu0 }
 0xc23   :  { %v1099_v34 = vadd.f32 %v1095_v33, %v1023_v31  ;;  %v2064_v35 = vpop.f32.mrb[9].mxu0  ;;  %v1319_v31 = vld [vmem:[#allocation2 + $0x50] sm:$0xff] }
 0xc25   :  { %2229 = vtanh.f32 %v1099_v34  ;;  %v1178_v46 = vmul.f32 0.5, %v1099_v34 }
 0xc26   :  { %v1173_v40 = vpop.f32.mrb[8].mxu1 }
 0xc27   :  { %v1177_v41 = vadd.f32 %v1173_v40, %v1101_v38  ;;  %v2071_v43 = vpop.f32.mrb[9].mxu1 }
 0xc29   :  { %2231 = vtanh.f32 %v1177_v41  ;;  %v1203_v47 = vmul.f32 0.5, %v1177_v41 }
 0xc2a   :  { %2233 = vtanh.f32 %v1178_v46 }
 0xc2b   :  { %2235 = vtanh.f32 %v1203_v47 }
 0xc2f   :  { %v2230_v44 = vpop.eup %2229 }
 0xc30   :  { %1185 = vrot.lane.b32.xlu1 %v2230_v44, %s2430_s2 }
 0xc33   :  { %v2232_v45 = vpop.eup %2231 }
 0xc34   :  { %1210 = vrot.lane.b32.xlu0 %v2232_v45, %s2430_s2  ;;  %v2234_v50 = vpop.eup %2233 }
 0xc35   :  { %v1180_v52 = vmul.f32 0.5, %v2234_v50  ;;  %v2236_v53 = vpop.eup %2235 }
 0xc36   :  { %v1205_v56 = vmul.f32 0.5, %v2236_v53 }
 0xc37   :  { %v1181_v54 = vadd.f32 0.5, %v1180_v52 }
 0xc38   :  { %v1206_v59 = vadd.f32 0.5, %v1205_v56 }
 0xc39   :  { %v1183_v63 = vmul.f32 %v1181_v54, %v2859_v62 }
 0xc3a   :  { %v1208_v6 = vmul.f32 %v1206_v59, %v2866_v5 }
 0xca2   :  { %v1186_v57 = vpop.permute.xlu1 %1185 }
 0xca3   :  { %v1188_v58 = vmul.f32 %v1186_v57, %v1181_v54 }
 0xca5   :  { %1190 = vrot.lane.b32.xlu1 %v1188_v58, %s2428_s30 }
 0xca6   :  { %v1211_v60 = vpop.permute.xlu0 %1210 }
 0xca7   :  { %v1213_v61 = vmul.f32 %v1211_v60, %v1206_v59 }
 0xca9   :  { %1215 = vrot.lane.b32.xlu0 %v1213_v61, %s2428_s30 }
 0xd17   :  { %v1191_v2 = vpop.permute.xlu1 %1190 }
 0xd18   :  { %v1193_v3 = vadd.f32 %v1191_v2, %v1183_v63 }
 0xd1a   :  { %2237 = vtanh.f32 %v1193_v3  ;;  %v1201_v57 = vsel %vm1006_vm3, %v1193_v3, %v2859_v62 }
 0xd1b   :  { %v1216_v9 = vpop.permute.xlu0 %1215 }
 0xd1c   :  { %v1218_v10 = vadd.f32 %v1216_v9, %v1208_v6 }
 0xd1e   :  { %2239 = vtanh.f32 %v1218_v10  ;;  %v1226_v61 = vsel %vm976_vm2, %v1218_v10, %v2866_v5 }
 0xd24   :  { %v2238_v20 = vpop.eup %2237 }
 0xd25   :  { %1196 = vrot.lane.b32.xlu1 %v2238_v20, %s2431_s0 }
 0xd28   :  { %v2240_v8 = vpop.eup %2239 }
 0xd29   :  { %1221 = vrot.lane.b32.xlu0 %v2240_v8, %s2431_s0 }
 0xd97   :  { %v1197_v11 = vpop.permute.xlu1 %1196 }
 0xd98   :  { %v2871_v12 = vmul.f32 %v1197_v11, %v1181_v54 }
 0xd9a   :  { %v2877_v28 = vsel %vm1006_vm3, %v2871_v12, %v2826_v21 }
 0xd9b   :  { %1243 = vrot.lane.b32.xlu1 %v2877_v28, %s2433_s11  ;;  %v1222_v13 = vpop.permute.xlu0 %1221 }
 0xd9c   :  { %v2881_v14 = vmul.f32 %v1222_v13, %v1206_v59 }
 0xd9e   :  { %v2887_v15 = vsel %vm976_vm2, %v2881_v14, %v2837_v24 }
 0xd9f   :  { %1321 = vrot.lane.b32.xlu0 %v2887_v15, %s2433_s11 }
 0xe0d   :  { %v1244_v18 = vpop.permute.xlu1 %1243 }
 0xe0e   :  { %2077 = vmatmul.mubr.msk.f32.vlgmr.msra.gmra.mrb[10].mxu0 %vm94_vm1, %v1244_v18  ;;  %v1459_v18 = vld [vmem:[#allocation2 + $0x30] sm:$0xff] }
 0xe0f   :  { %2152 = vmatpush3.bf16.msra.mxu0 %v2562_v4  ;;  %2090 = vmatprep.mubr.msk.f32.mxu0 %vm2426_vm0, %v2427_v1 }
 0xe10   :  { %2156 = vmatprep.subr.bf16.mxu0 %v2425_v0 }
 0xe11   :  { %v1322_v21 = vpop.permute.xlu0 %1321 }
 0xe12   :  { %2084 = vmatmul.mubr.msk.f32.vlgmr.msra.gmra.mrb[10].mxu1 %vm94_vm1, %v1322_v21 }
 0xe13   :  { %2155 = vmatpush3.bf16.msra.mxu1 %v2564_v7  ;;  %2097 = vmatprep.mubr.msk.f32.mxu1 %vm2426_vm0, %v2427_v1 }
 0xe14   :  { %2159 = vmatprep.subr.bf16.mxu1 %v2425_v0 }
 0xee1   :  { %v1313_v24 = vpop.f32.mrb[10].mxu0 }
 0xee2   :  { %v1317_v27 = vadd.f32 %v1313_v24, %v1241_v22  ;;  %v2078_v30 = vpop.f32.mrb[11].mxu0  ;;  %v1537_v24 = vld [vmem:[#allocation2 + $0x48] sm:$0xff] }
 0xee4   :  { %2241 = vtanh.f32 %v1317_v27  ;;  %v1396_v41 = vmul.f32 0.5, %v1317_v27 }
 0xee5   :  { %v1391_v33 = vpop.f32.mrb[10].mxu1 }
 0xee6   :  { %v1395_v34 = vadd.f32 %v1391_v33, %v1319_v31  ;;  %v2085_v35 = vpop.f32.mrb[11].mxu1 }
 0xee8   :  { %2243 = vtanh.f32 %v1395_v34  ;;  %v1421_v43 = vmul.f32 0.5, %v1395_v34 }
 0xee9   :  { %2245 = vtanh.f32 %v1396_v41 }
 0xeea   :  { %2247 = vtanh.f32 %v1421_v43 }
 0xeee   :  { %v2242_v38 = vpop.eup %2241 }
 0xeef   :  { %1403 = vrot.lane.b32.xlu1 %v2242_v38, %s2430_s2 }
 0xef2   :  { %v2244_v40 = vpop.eup %2243 }
 0xef3   :  { %1428 = vrot.lane.b32.xlu0 %v2244_v40, %s2430_s2  ;;  %v2246_v0 = vpop.eup %2245 }
 0xef4   :  { %v1398_v44 = vmul.f32 0.5, %v2246_v0  ;;  %v2248_v45 = vpop.eup %2247 }
 0xef5   :  { %v1423_v47 = vmul.f32 0.5, %v2248_v45 }
 0xef6   :  { %v1399_v46 = vadd.f32 0.5, %v1398_v44 }
 0xef7   :  { %v1424_v53 = vadd.f32 0.5, %v1423_v47 }
 0xef8   :  { %v1401_v58 = vmul.f32 %v1399_v46, %v1201_v57 }
 0xef9   :  { %v1426_v63 = vmul.f32 %v1424_v53, %v1226_v61 }
 0xf61   :  { %v1404_v50 = vpop.permute.xlu1 %1403 }
 0xf62   :  { %v1406_v52 = vmul.f32 %v1404_v50, %v1399_v46 }
 0xf64   :  { %1408 = vrot.lane.b32.xlu1 %v1406_v52, %s2428_s30 }
 0xf65   :  { %v1429_v54 = vpop.permute.xlu0 %1428 }
 0xf66   :  { %v1431_v56 = vmul.f32 %v1429_v54, %v1424_v53 }
 0xf68   :  { %1433 = vrot.lane.b32.xlu0 %v1431_v56, %s2428_s30 }
 0xfd6   :  { %v1409_v59 = vpop.permute.xlu1 %1408 }
 0xfd7   :  { %v1411_v60 = vadd.f32 %v1409_v59, %v1401_v58 }
 0xfd9   :  { %2249 = vtanh.f32 %v1411_v60  ;;  %v1419_v47 = vsel %vm776_vm13, %v1411_v60, %v1201_v57 }
 0xfda   :  { %v1434_v2 = vpop.permute.xlu0 %1433 }
 0xfdb   :  { %v1436_v6 = vadd.f32 %v1434_v2, %v1426_v63 }
 0xfdd   :  { %2251 = vtanh.f32 %v1436_v6  ;;  %v1444_v54 = vsel %vm746_vm12, %v1436_v6, %v1226_v61 }
 0xfe3   :  { %v2250_v9 = vpop.eup %2249 }
 0xfe4   :  { %1414 = vrot.lane.b32.xlu1 %v2250_v9, %s2431_s0 }
 0xfe7   :  { %v2252_v20 = vpop.eup %2251 }
 0xfe8   :  { %1439 = vrot.lane.b32.xlu0 %v2252_v20, %s2431_s0 }
0x1056   :  { %v1415_v8 = vpop.permute.xlu1 %1414 }
0x1057   :  { %v2913_v62 = vmul.f32 %v1415_v8, %v1399_v46 }
0x1059   :  { %v1418_v3 = vsel %vm776_vm13, %v2913_v62, %v2877_v28 }
0x105a   :  { %1461 = vrot.lane.b32.xlu1 %v1418_v3, %s2433_s11  ;;  %v1440_v5 = vpop.permute.xlu0 %1439 }
0x105b   :  { %v2920_v10 = vmul.f32 %v1440_v5, %v1424_v53 }
0x105d   :  { %v1443_v11 = vsel %vm746_vm12, %v2920_v10, %v2887_v15 }
0x105e   :  { %1539 = vrot.lane.b32.xlu0 %v1443_v11, %s2433_s11 }
0x10cc   :  { %v1462_v13 = vpop.permute.xlu1 %1461 }
0x10cd   :  { %2091 = vmatmul.mubr.msk.f32.vlgmr.msra.gmra.mrb[12].mxu0 %vm94_vm1, %v1462_v13 }
0x10ce   :  { %2158 = vmatpush3.bf16.msra.mxu0 %v2562_v4  ;;  %2104 = vmatprep.mubr.msk.f32.mxu0 %vm2426_vm0, %v2427_v1 }
0x10d0   :  { %v1540_v28 = vpop.permute.xlu0 %1539 }
0x10d1   :  { %2098 = vmatmul.mubr.msk.f32.vlgmr.msra.gmra.mrb[12].mxu1 %vm94_vm1, %v1540_v28 }
0x10d2   :  { %2161 = vmatpush3.bf16.msra.mxu1 %v2564_v7  ;;  %2111 = vmatprep.mubr.msk.f32.mxu1 %vm2426_vm0, %v2427_v1 }
0x11a0   :  { %v1531_v15 = vpop.f32.mrb[12].mxu0 }
0x11a1   :  { %v1535_v21 = vadd.f32 %v1531_v15, %v1459_v18  ;;  %v2092_v22 = vpop.f32.mrb[13].mxu0  ;;  %v1755_v15 = vld [vmem:[#allocation2 + $0x40] sm:$0xff] }
0x11a3   :  { %2253 = vtanh.f32 %v1535_v21  ;;  %v1614_v7 = vmul.f32 0.5, %v1535_v21 }
0x11a4   :  { %v1609_v27 = vpop.f32.mrb[12].mxu1 }
0x11a5   :  { %v1613_v30 = vadd.f32 %v1609_v27, %v1537_v24  ;;  %v2099_v4 = vpop.f32.mrb[13].mxu1 }
0x11a7   :  { %2255 = vtanh.f32 %v1613_v30  ;;  %v1639_v34 = vmul.f32 0.5, %v1613_v30 }
0x11a8   :  { %2257 = vtanh.f32 %v1614_v7 }
0x11a9   :  { %2259 = vtanh.f32 %v1639_v34 }
0x11ad   :  { %v2254_v31 = vpop.eup %2253 }
0x11ae   :  { %1621 = vrot.lane.b32.xlu1 %v2254_v31, %s2430_s2 }
0x11b1   :  { %v2256_v33 = vpop.eup %2255 }
0x11b2   :  { %1646 = vrot.lane.b32.xlu0 %v2256_v33, %s2430_s2  ;;  %v2258_v1 = vpop.eup %2257 }
0x11b3   :  { %v1616_v35 = vmul.f32 0.5, %v2258_v1  ;;  %v2260_v38 = vpop.eup %2259 }
0x11b4   :  { %v1641_v41 = vmul.f32 0.5, %v2260_v38 }
0x11b5   :  { %v1617_v40 = vadd.f32 0.5, %v1616_v35 }
0x11b6   :  { %v1642_v44 = vadd.f32 0.5, %v1641_v41 }
0x11b7   :  { %v1619_v50 = vmul.f32 %v1617_v40, %v1419_v47 }
0x11b8   :  { %v1644_v56 = vmul.f32 %v1642_v44, %v1444_v54 }
0x1220   :  { %v1622_v43 = vpop.permute.xlu1 %1621 }
0x1221   :  { %v1624_v0 = vmul.f32 %v1622_v43, %v1617_v40 }
0x1223   :  { %1626 = vrot.lane.b32.xlu1 %v1624_v0, %s2428_s30 }
0x1224   :  { %v1647_v45 = vpop.permute.xlu0 %1646 }
0x1225   :  { %v1649_v46 = vmul.f32 %v1647_v45, %v1642_v44 }
0x1227   :  { %1651 = vrot.lane.b32.xlu0 %v1649_v46, %s2428_s30 }
0x1295   :  { %v1627_v52 = vpop.permute.xlu1 %1626 }
0x1296   :  { %v1629_v53 = vadd.f32 %v1627_v52, %v1619_v50 }
0x1298   :  { %2261 = vtanh.f32 %v1629_v53  ;;  %v1637_v0 = vsel %vm546_vm9, %v1629_v53, %v1419_v47  ;;  %v519_v47 = vsel %vm516_vm8, %v2687_v39, 0.0  ;;  %v320_v53 = vsel %vm314_vm5, %v2633_v55, 0.0 }
0x1299   :  { %v1652_v58 = vpop.permute.xlu0 %1651  ;;  %v979_v55 = vsel %vm976_vm2, %v2819_v19, 0.0  ;;  %v779_v39 = vsel %vm776_vm13, %v2764_v32, 0.0  ;;  %v1420_v32 = vsel %vm776_vm13, %v2913_v62, 0.0  ;;  %v1227_v19 = vsel %vm976_vm2, %v2881_v14, 0.0 }
0x129a   :  { %v1654_v59 = vadd.f32 %v1652_v58, %v1644_v56 }
0x129c   :  { %2263 = vtanh.f32 %v1654_v59  ;;  %v1662_v50 = vsel %vm516_vm8, %v1654_v59, %v1444_v54  ;;  %v549_v54 = vsel %vm546_vm9, %v2698_v42, 0.0  ;;  %v1202_v42 = vsel %vm1006_vm3, %v2871_v12, 0.0 }
0x12a2   :  { %v2262_v63 = vpop.eup %2261 }
0x12a3   :  { %1632 = vrot.lane.b32.xlu1 %v2262_v63, %s2431_s0 }
0x12a6   :  { %v2264_v2 = vpop.eup %2263 }
0x12a7   :  { %1657 = vrot.lane.b32.xlu0 %v2264_v2, %s2431_s0 }
0x1315   :  { %v1633_v9 = vpop.permute.xlu1 %1632 }
0x1316   :  { %v2945_v20 = vmul.f32 %v1633_v9, %v1617_v40  ;;  %v283_v9 = vsel %vm277_vm4, %v2623_v51, 0.0  ;;  %v749_v51 = vsel %vm746_vm12, %v2753_v29, 0.0  ;;  %v1009_v29 = vsel %vm1006_vm3, %v2830_v23, 0.0 }
0x1317   :  { %v1445_v23 = vsel %vm746_vm12, %v2920_v10, 0.0 }
0x1318   :  { %v2950_v57 = vsel %vm546_vm9, %v2945_v20, %v1418_v3  ;;  %v1677_v3 = vld [vmem:[#allocation2 + $0x38] sm:$0xff]  ;;  %v1638_v17 = vsel %vm546_vm9, %v2945_v20, 0.0 }
0x1319   :  { %1679 = vrot.lane.b32.xlu1 %v2950_v57, %s2433_s11  ;;  %v1658_v60 = vpop.permute.xlu0 %1657 }
0x131a   :  { %v2954_v61 = vmul.f32 %v1658_v60, %v1642_v44 }
0x131c   :  { %v2959_v6 = vsel %vm516_vm8, %v2954_v61, %v1443_v11  ;;  %v1663_v26 = vsel %vm516_vm8, %v2954_v61, 0.0 }
0x131d   :  { %1757 = vrot.lane.b32.xlu0 %v2959_v6, %s2433_s11 }
0x138b   :  { %v1680_v8 = vpop.permute.xlu1 %1679 }
0x138c   :  { %2105 = vmatmul.mubr.msk.f32.vlgmr.msra.gmra.mrb[14].mxu0 %vm94_vm1, %v1680_v8 }
0x138f   :  { %v1758_v5 = vpop.permute.xlu0 %1757 }
0x1390   :  { %2112 = vmatmul.mubr.msk.f32.vlgmr.msra.gmra.mrb[14].mxu1 %vm94_vm1, %v1758_v5 }
0x145f   :  { %v1749_v13 = vpop.f32.mrb[14].mxu0 }
0x1460   :  { %v1753_v28 = vadd.f32 %v1749_v13, %v1677_v3  ;;  %v2106_v18 = vpop.f32.mrb[15].mxu0 }
0x1462   :  { %2265 = vtanh.f32 %v1753_v28  ;;  %v1832_v30 = vmul.f32 0.5, %v1753_v28 }
0x1463   :  { %v1827_v21 = vpop.f32.mrb[14].mxu1 }
0x1464   :  { %v1831_v22 = vadd.f32 %v1827_v21, %v1755_v15  ;;  %v2113_v24 = vpop.f32.mrb[15].mxu1 }
0x1466   :  { %2267 = vtanh.f32 %v1831_v22  ;;  %v1856_v4 = vmul.f32 0.5, %v1831_v22 }
0x1467   :  { %2269 = vtanh.f32 %v1832_v30 }
0x1468   :  { %2271 = vtanh.f32 %v1856_v4 }
0x146c   :  { %v2266_v11 = vpop.eup %2265 }
0x146d   :  { %1839 = vrot.lane.b32.xlu1 %v2266_v11, %s2430_s2 }
0x1470   :  { %v2268_v27 = vpop.eup %2267 }
0x1471   :  { %1863 = vrot.lane.b32.xlu0 %v2268_v27, %s2430_s2  ;;  %v2270_v31 = vpop.eup %2269 }
0x1472   :  { %v1834_v33 = vmul.f32 0.5, %v2270_v31  ;;  %v2272_v7 = vpop.eup %2271 }
0x1473   :  { %v1858_v1 = vmul.f32 0.5, %v2272_v7 }
0x1474   :  { %v1835_v34 = vadd.f32 0.5, %v1834_v33 }
0x1475   :  { %v1859_v40 = vadd.f32 0.5, %v1858_v1 }
0x1476   :  { %v1837_v44 = vmul.f32 %v1835_v34, %v1637_v0 }
0x1477   :  { %v1861_v52 = vmul.f32 %v1859_v40, %v1662_v50 }
0x14df   :  { %v1840_v35 = vpop.permute.xlu1 %1839 }
0x14e0   :  { %v1842_v38 = vmul.f32 %v1840_v35, %v1835_v34 }
0x14e2   :  { %1844 = vrot.lane.b32.xlu1 %v1842_v38, %s2428_s30 }
0x14e3   :  { %v1864_v41 = vpop.permute.xlu0 %1863 }
0x14e4   :  { %v1866_v43 = vmul.f32 %v1864_v41, %v1859_v40 }
0x14e6   :  { %1868 = vrot.lane.b32.xlu0 %v1866_v43, %s2428_s30 }
0x1554   :  { %v1845_v45 = vpop.permute.xlu1 %1844 }
0x1555   :  { %v1847_v46 = vadd.f32 %v1845_v45, %v1837_v44 }
0x1557   :  { %2273 = vtanh.f32 %v1847_v46 }
0x1558   :  { %v1869_v56 = vpop.permute.xlu0 %1868 }
0x1559   :  { %v1871_v58 = vadd.f32 %v1869_v56, %v1861_v52 }
0x155b   :  { %2275 = vtanh.f32 %v1871_v58 }
0x1561   :  { %v2274_v63 = vpop.eup %2273 }
0x1562   :  { %1850 = vrot.lane.b32.xlu1 %v2274_v63, %s2431_s0 }
0x1565   :  { %v2276_v2 = vpop.eup %2275 }
0x1566   :  { %322 = vrot.lane.b32.xlu1 %v283_v9, %s2433_s11  ;;  %1874 = vrot.lane.b32.xlu0 %v2276_v2, %s2431_s0 }
0x156a   :  { %551 = vrot.lane.b32.xlu1 %v519_v47, %s2433_s11  ;;  %327 = vrot.lane.b32.xlu0 %v320_v53, %s2433_s11 }
0x156e   :  { %781 = vrot.lane.b32.xlu1 %v749_v51, %s2433_s11  ;;  %557 = vrot.lane.b32.xlu0 %v549_v54, %s2433_s11 }
0x1572   :  { %1011 = vrot.lane.b32.xlu1 %v979_v55, %s2433_s11  ;;  %787 = vrot.lane.b32.xlu0 %v779_v39, %s2433_s11 }
0x1576   :  { %1229 = vrot.lane.b32.xlu1 %v1202_v42, %s2433_s11  ;;  %1017 = vrot.lane.b32.xlu0 %v1009_v29, %s2433_s11 }
0x157a   :  { %1447 = vrot.lane.b32.xlu1 %v1420_v32, %s2433_s11  ;;  %1235 = vrot.lane.b32.xlu0 %v1227_v19, %s2433_s11 }
0x157e   :  { %1665 = vrot.lane.b32.xlu1 %v1638_v17, %s2433_s11  ;;  %1453 = vrot.lane.b32.xlu0 %v1445_v23, %s2433_s11 }
0x1582   :  { %1671 = vrot.lane.b32.xlu0 %v1663_v26, %s2433_s11 }
0x15d4   :  { %v1851_v16 = vpop.permute.xlu1 %1850 }
0x15d5   :  { %v1853_v12 = vmul.f32 %v1851_v16, %v1835_v34 }
0x15d7   :  { %v1855_v37 = vsel %vm314_vm5, %v1853_v12, 0.0  ;;  %v1854_v10 = vsel %vm314_vm5, %v1853_v12, %v2950_v57 }
0x15d8   :  { %1881 = vrot.lane.b32.xlu1 %v1855_v37, %s2433_s11  ;;  %v323_v14 = vpop.permute.xlu1 %322  ;;  %v1875_v25 = vpop.permute.xlu0 %1874 }
0x15d9   :  { %325 = vst.msk [vmem:[#allocation10] sm:$0xff] %vm94_vm1, %v323_v14  ;;  %v1877_v62 = vmul.f32 %v1875_v25, %v1859_v40 }
0x15db   :  { %v1879_v36 = vsel %vm277_vm4, %v1877_v62, 0.0  ;;  %v1878_v60 = vsel %vm277_vm4, %v1877_v62, %v2959_v6 }
0x15dc   :  { %1893 = vrot.lane.b32.xlu1 %v1854_v10, %s2433_s11  ;;  %v552_v59 = vpop.permute.xlu1 %551  ;;  %1887 = vrot.lane.b32.xlu0 %v1879_v36, %s2433_s11  ;;  %v328_v20 = vpop.permute.xlu0 %327 }
0x15dd   :  { %555 = vst.msk [vmem:[#allocation10 + $0x8] sm:$0xff] %vm94_vm1, %v552_v59  ;;  %331 = vst.msk [vmem:[#allocation10 + $0x78] sm:$0xff] %vm94_vm1, %v328_v20 }
0x15e0   :  { %v782_v61 = vpop.permute.xlu1 %781  ;;  %1898 = vrot.lane.b32.xlu0 %v1878_v60, %s2433_s11  ;;  %v558_v48 = vpop.permute.xlu0 %557 }
0x15e1   :  { %785 = vst.msk [vmem:[#allocation10 + $0x10] sm:$0xff] %vm94_vm1, %v782_v61  ;;  %561 = vst.msk [vmem:[#allocation10 + $0x70] sm:$0xff] %vm94_vm1, %v558_v48 }
0x15e4   :  { %v1012_v57 = vpop.permute.xlu1 %1011  ;;  %v788_v8 = vpop.permute.xlu0 %787 }
0x15e5   :  { %1015 = vst.msk [vmem:[#allocation10 + $0x18] sm:$0xff] %vm94_vm1, %v1012_v57  ;;  %791 = vst.msk [vmem:[#allocation10 + $0x68] sm:$0xff] %vm94_vm1, %v788_v8 }
0x15e8   :  { %v1230_v5 = vpop.permute.xlu1 %1229  ;;  %v1018_v3 = vpop.permute.xlu0 %1017 }
0x15e9   :  { %1233 = vst.msk [vmem:[#allocation10 + $0x20] sm:$0xff] %vm94_vm1, %v1230_v5  ;;  %1021 = vst.msk [vmem:[#allocation10 + $0x60] sm:$0xff] %vm94_vm1, %v1018_v3 }
0x15ec   :  { %v1448_v49 = vpop.permute.xlu1 %1447  ;;  %v1236_v6 = vpop.permute.xlu0 %1235 }
0x15ed   :  { %1451 = vst.msk [vmem:[#allocation10 + $0x28] sm:$0xff] %vm94_vm1, %v1448_v49  ;;  %1239 = vst.msk [vmem:[#allocation10 + $0x58] sm:$0xff] %vm94_vm1, %v1236_v6 }
0x15f0   :  { %v1666_v13 = vpop.permute.xlu1 %1665  ;;  %v1454_v28 = vpop.permute.xlu0 %1453 }
0x15f1   :  { %1669 = vst.msk [vmem:[#allocation10 + $0x30] sm:$0xff] %vm94_vm1, %v1666_v13  ;;  %1457 = vst.msk [vmem:[#allocation10 + $0x50] sm:$0xff] %vm94_vm1, %v1454_v28 }
0x15f4   :  { %v1672_v18 = vpop.permute.xlu0 %1671 }
0x15f5   :  { %1675 = vst.msk [vmem:[#allocation10 + $0x48] sm:$0xff] %vm94_vm1, %v1672_v18 }
0x164a   :  { %v1882_v15 = vpop.permute.xlu1 %1881 }
0x164b   :  { %1885 = vst.msk [vmem:[#allocation10 + $0x38] sm:$0xff] %vm94_vm1, %v1882_v15 }
0x164e   :  { %v1894_v21 = vpop.permute.xlu1 %1893  ;;  %v1888_v22 = vpop.permute.xlu0 %1887 }
0x164f   :  { %1896 = vst.msk [vmem:[#allocation11] sm:$0xff] %vm94_vm1, %v1894_v21  ;;  %1891 = vst.msk [vmem:[#allocation10 + $0x40] sm:$0xff] %vm94_vm1, %v1888_v22 }
0x1650   :  { %2376 = shalt.err (!%p2373_p8)
}
0x1651   :  { %s2377_s19 = scalar_lea.hbm %s3099_s6, 2048 }
0x1652   :  { %p2378_p9 = scmp.ne.s32.totalorder %s3099_s6, %s2377_s19  ;;  %p2381_p10 = scmp.lt.u32.totalorder %s2377_s19, %s3099_s6 }
0x1654   :  { %p2383_p11 = pnand %p2381_p10, %p2378_p9 }
0x1656   :  { %2386 = shalt.err (!%p2383_p11)
}
0x1657   :  { %1914 = dma.vmem_to_hbm [thread:$0]  %s1909_s15, 2048, %s3099_s6, [#allocation4], %s2421_s13, %s2421_s13, %s2422_s14   ;;  %v1899_v24 = vpop.permute.xlu0 %1898 }
0x1658   :  { %1902 = vst.msk [vmem:[#allocation11 + $0x8] sm:$0xff] %vm94_vm1, %v1899_v24  ;;  %s2387_s4 = scalar_lea.vmem %s1921_s1, 256  ;;  %p2392_p13 = scmp.lt.s32.totalorder %s1921_s1, %s1921_s1 }
0x1659   :  { %p2388_p12 = scmp.ne.s32.totalorder %s1921_s1, %s2387_s4  ;;  %p2393_p0 = scmp.lt.s32.totalorder %s2387_s4, %s2387_s4 }
0x165b   :  { %p2394_p1 = por %p2393_p0, %p2392_p13 }
0x165d   :  { %p2395_p2 = pnand %p2394_p1, %p2388_p12 }
0x165f   :  { %2398 = shalt.err (!%p2395_p2)
}
0x1660   :  { %s2399_s26 = scalar_lea.hbm %s3100_s7, 256 }
0x1661   :  { %p2400_p3 = scmp.ne.s32.totalorder %s3100_s7, %s2399_s26  ;;  %p2403_p4 = scmp.lt.u32.totalorder %s2399_s26, %s3100_s7 }
0x1663   :  { %p2405_p5 = pnand %p2403_p4, %p2400_p3 }
0x1665   :  { %2408 = shalt.err (!%p2405_p5)
}
0x1666   :  { %1926 = dma.vmem_to_hbm [thread:$0]  %s1921_s1, 256, %s3100_s7, [#allocation12], %s2421_s13, %s2421_s13, %s2422_s14  }
0x1667   :  { %2415 = dma.done.wait [#allocation4], 2048  }
0x1668   :  { %2416 = vsyncadd [#allocation4], 4294965248 }
0x1669   :  { %2417 = dma.done.wait [#allocation12], 256  }
0x166a   :  { %2418 = vsyncadd [#allocation12], 4294967040 }
0x166b   :  { %1933 = vsyncpa [#allocation3], 1 }
0x166c   :  { %1934 = vsyncpa [#allocation6], 1 }
0x166d   :  { %1935 = vsyncpa [#allocation9], 1 }
0x166e   :  { %1936 = vsyncpa [#allocation4], 1 }
0x166f   :  { %1937 = vsyncpa [#allocation12], 1 }

</bundles_post_ra>
